<compile_context>
chip_gen: v6e
topology: v6e:2x2x1
jax: 0.10.0
libtpu: 0.0.40
codegen_flags: <defaults>
</compile_context>

<pallas_src>
import functools

import numpy as np
import jax
import jax.numpy as jnp
from jax import lax
from jax.experimental import pallas as pl
from jax.experimental.pallas import tpu as pltpu


# ----------------------------------------------------------------------------
# Pallas kernel: one PatchCluster(Transformer) stream element per grid step.
# ----------------------------------------------------------------------------
def _patch_cluster_kernel(x_ref, src_ref,
                          wq_ref, bq_ref, wk_ref, bk_ref, wv_ref, bv_ref,
                          wm_ref, bm_ref,
                          w1x_ref, w1m_ref, b1_ref,
                          w2_ref, b2_ref,
                          out_ref, rel_ref,
                          *, num_heads):
    f32 = jnp.float32
    x = x_ref[...].astype(f32)      # (C, N)
    src = src_ref[...].astype(f32)  # (C, N)
    C, N = x.shape
    H = num_heads
    dim = C // H

    def conv1x1(w_ref, b_ref, t):
        return jnp.dot(w_ref[...], t, preferred_element_type=f32) + b_ref[...]

    # q/k/v projections.  Weight rows were pre-permuted in the wrapper so head
    # h occupies contiguous rows [h*dim, (h+1)*dim); 1/sqrt(dim) is folded
    # into wq/bq; BN affine is folded into w1x/w1m/b1.
    q = conv1x1(wq_ref, bq_ref, x)      # (C, N), already scaled
    k = conv1x1(wk_ref, bk_ref, src)
    v = conv1x1(wv_ref, bv_ref, src)

    # Batched multi-head attention: single dot_general over the head axis
    # instead of a Python loop + concatenate.
    q3 = q.reshape(H, dim, N)
    k3 = k.reshape(H, dim, N)
    v3 = v.reshape(H, dim, N)
    # s[h, n, m] = sum_d q3[h, d, n] * k3[h, d, m]
    s = lax.dot_general(q3, k3, (((1,), (1,)), ((0,), (0,))),
                        preferred_element_type=f32)                 # (H, N, N)
    s = s - jnp.max(s, axis=-1, keepdims=True)
    e = jnp.exp(s)
    p = e / jnp.sum(e, axis=-1, keepdims=True)                      # exact: feeds cos
    # attn[h, d, n] = sum_m v3[h, d, m] * p[h, n, m]
    attn = lax.dot_general(v3, p, (((2,), (2,)), ((0,), (0,))),
                           preferred_element_type=f32)              # (H, dim, N)
    xattn = attn.reshape(C, N)

    merged = conv1x1(wm_ref, bm_ref, xattn)                         # (C, N)

    # MLP([2C, 2C, C]); channel concat folded into two matmuls on W1's halves,
    # eval-mode BatchNorm already folded into w1x/w1m/b1.
    h1 = (jnp.dot(w1x_ref[...], x, preferred_element_type=f32)
          + jnp.dot(w1m_ref[...], merged, preferred_element_type=f32)
          + b1_ref[...])
    h1 = jnp.maximum(h1, 0.0)
    cp = jnp.dot(w2_ref[...], h1, preferred_element_type=f32) + b2_ref[...]  # (C, N)

    # Cosine relation per position: one (1, N) divide instead of two (C, N)
    # normalizations.
    num = jnp.sum(x * cp, axis=0, keepdims=True)                    # (1, N)
    nx = jnp.sqrt(jnp.sum(x * x, axis=0, keepdims=True)) + 1e-5
    ncp = jnp.sqrt(jnp.sum(cp * cp, axis=0, keepdims=True)) + 1e-5
    cos = num / (nx * ncp)                                          # (1, N)
    rel_ref[...] = cos

    # Temperature softmax re-weighting.  cos in [-1, 1] => exp(cos/0.025) is
    # bounded by e^40: no row-max pass needed.  Reciprocal goes to the EUP.
    e2 = jnp.exp(cos * (1.0 / 0.025))
    w = e2 * pl.reciprocal(jnp.sum(e2, axis=-1, keepdims=True), approx=True) + 1.0
    out_ref[...] = x * w


# ----------------------------------------------------------------------------
# Parameters (deterministic, synthetic; mirrors the PyTorch module's shapes)
# ----------------------------------------------------------------------------
def init_params(key, feature_dim, num_heads):
    C = feature_dim
    C2 = 2 * C

    def conv(k, cout, cin):
        kw, kb = jax.random.split(k)
        bound = 1.0 / np.sqrt(cin)
        w = jax.random.uniform(kw, (cout, cin), jnp.float32, -bound, bound)
        b = jax.random.uniform(kb, (cout, 1), jnp.float32, -bound, bound)
        return w, b

    ks = jax.random.split(key, 6)
    wq, bq = conv(ks[0], C, C)
    wk, bk = conv(ks[1], C, C)
    wv, bv = conv(ks[2], C, C)
    wm, bm = conv(ks[3], C, C)
    w1, b1 = conv(ks[4], C2, C2)
    w2, b2 = conv(ks[5], C, C2)
    b2 = jnp.zeros_like(b2)  # nn.init.constant_(self.mlp[-1].bias, 0.0)

    # BatchNorm1d(2C) in eval mode with default params / running stats.
    # TODO(synk): training-mode BN (batch statistics) is not reproduced here.
    eps = 1e-5
    gamma = jnp.ones((C2, 1), jnp.float32)
    beta = jnp.zeros((C2, 1), jnp.float32)
    running_mean = jnp.zeros((C2, 1), jnp.float32)
    running_var = jnp.ones((C2, 1), jnp.float32)
    bn_scale = gamma / jnp.sqrt(running_var + eps)
    bn_bias = beta - running_mean * bn_scale

    return dict(num_heads=num_heads, wq=wq, bq=bq, wk=wk, bk=bk, wv=wv, bv=bv,
                wm=wm, bm=bm, w1=w1, b1=b1, bn_scale=bn_scale, bn_bias=bn_bias,
                w2=w2, b2=b2)


def _kernel_weights(p, feature_dim):
    """Wrapper-side weight prep: head permutation, attention-scale fold,
    W1 split into [x | message] halves, and BN-affine fold into W1/b1."""
    C = feature_dim
    H = p['num_heads']
    dim = C // H
    # PyTorch view(B, dim, H, N): channel c = d*H + h.  We want head-contiguous
    # rows c' = h*dim + d, so perm[h*dim + d] = d*H + h.
    perm = np.array([d * H + h for h in range(H) for d in range(dim)], np.int32)
    scale = np.float32(1.0 / np.sqrt(dim))
    wq = p['wq'][perm, :] * scale
    bq = p['bq'][perm, :] * scale
    wk, bk = p['wk'][perm, :], p['bk'][perm, :]
    wv, bv = p['wv'][perm, :], p['bv'][perm, :]
    wm = p['wm'][:, perm]                      # same perm on merge-conv columns
    bns, bnb = p['bn_scale'], p['bn_bias']     # fold eval-mode BN into W1/b1
    w1x = p['w1'][:, :C] * bns
    w1m = p['w1'][:, C:] * bns
    b1 = p['b1'] * bns + bnb
    return (wq, bq, wk, bk, wv, bv, wm, p['bm'],
            w1x, w1m, b1, p['w2'], p['b2'])


# ----------------------------------------------------------------------------
# Wrappers
# ----------------------------------------------------------------------------
def patch_cluster_stream(x, src, params):
    """x, src: (Btot, C, N) -> (reweighted x (Btot,C,N), relation (Btot,N))."""
    Btot, C, N = x.shape
    weights = _kernel_weights(params, C)
    kernel = functools.partial(_patch_cluster_kernel,
                               num_heads=params['num_heads'])

    def full_spec(arr):
        nd = arr.ndim
        return pl.BlockSpec(arr.shape, lambda b, _n=nd: (0,) * _n)

    batched_spec = pl.BlockSpec((None, C, N), lambda b: (b, 0, 0))
    rel_spec = pl.BlockSpec((None, 1, N), lambda b: (b, 0, 0))

    in_specs = [batched_spec, batched_spec] + [full_spec(w) for w in weights]
    out_shape = (jax.ShapeDtypeStruct((Btot, C, N), jnp.float32),
                 jax.ShapeDtypeStruct((Btot, 1, N), jnp.float32))
    out_specs = (batched_spec, rel_spec)

    out, rel = pl.pallas_call(
        kernel,
        grid=(Btot,),
        in_specs=in_specs,
        out_specs=out_specs,
        out_shape=out_shape,
        compiler_params=pltpu.CompilerParams(dimension_semantics=("parallel",)),
    )(x, src, *weights)
    return out, rel[:, 0, :]


def cecm_forward(support, query, layer_params, layer_names):
    """support, query: (B, C, N) float32, same NCW layout as the PyTorch module.

    Returns (support, query, relation_map0, relation_map1), shapes
    (B,C,N), (B,C,N), (B,N), (B,N).
    """
    # TODO(synk): the reference module's in-loop (N,C)<->(C,N) flip makes >1
    # layer only well-defined when N == C; we evaluate a single layer here.
    B = support.shape[0]
    rel0 = rel1 = None
    for params, name in zip(layer_params, layer_names):
        # Fuse the support-stream and query-stream into ONE pallas_call by
        # stacking along batch: one launch, one weight DMA pipeline.
        x_all = jnp.concatenate([support, query], axis=0)        # (2B, C, N)
        if name == 'cross':
            src_all = jnp.concatenate([query, support], axis=0)
        else:
            src_all = jnp.concatenate([support, query], axis=0)
        out_all, rel_all = patch_cluster_stream(x_all, src_all, params)
        support, query = out_all[:B], out_all[B:]
        rel0, rel1 = rel_all[:B], rel_all[B:]
    return support, query, rel0, rel1


# ----------------------------------------------------------------------------
# Pure-JAX reference (mirrors the PyTorch math literally) for verification.
# ----------------------------------------------------------------------------
def _ref_stream(x, src, p):
    B, C, N = x.shape
    H = p['num_heads']
    dim = C // H

    def conv(w, b, t):
        return jnp.einsum('oi,bin->bon', w, t) + b[None, :, :]

    q = conv(p['wq'], p['bq'], x).reshape(B, dim, H, N)
    k = conv(p['wk'], p['bk'], src).reshape(B, dim, H, N)
    v = conv(p['wv'], p['bv'], src).reshape(B, dim, H, N)
    scores = jnp.einsum('bdhn,bdhm->bhnm', q, k) / (dim ** 0.5)
    prob = jax.nn.softmax(scores, axis=-1)
    xa = jnp.einsum('bhnm,bdhm->bdhn', prob, v).reshape(B, C, N)
    merged = conv(p['wm'], p['bm'], xa)
    cat = jnp.concatenate([x, merged], axis=1)
    h1 = conv(p['w1'], p['b1'], cat)
    h1 = h1 * p['bn_scale'][None] + p['bn_bias'][None]
    h1 = jnp.maximum(h1, 0.0)
    cp = conv(p['w2'], p['b2'], h1)
    xn = x / (jnp.linalg.norm(x, axis=1, keepdims=True) + 1e-5)
    cpn = cp / (jnp.linalg.norm(cp, axis=1, keepdims=True) + 1e-5)
    cos = jnp.sum(xn * cpn, axis=1)                     # (B, N)
    w = jax.nn.softmax(cos / 0.025, axis=-1) + 1.0
    return x * w[:, None, :], cos


def _ref_cecm(support, query, layer_params, layer_names):
    rel0 = rel1 = None
    for p, name in zip(layer_params, layer_names):
        src0, src1 = (query, support) if name == 'cross' else (support, query)
        new_s, rel0 = _ref_stream(support, src0, p)
        new_q, rel1 = _ref_stream(query, src1, p)
        support, query = new_s, new_q
    return support, query, rel0, rel1


# ----------------------------------------------------------------------------
if __name__ == "__main__":
    B, C, N = 2, 32, 16          # batch, feature_dim (divisible by 4 heads), N=h*w
    num_heads = 4
    layer_names = ['cross']

    key = jax.random.PRNGKey(0)
    k_s, k_q, k_p = jax.random.split(key, 3)
    support = jax.random.normal(k_s, (B, C, N), jnp.float32)
    query = jax.random.normal(k_q, (B, C, N), jnp.float32)
    layer_params = [init_params(k_p, C, num_heads) for _ in layer_names]

    sup_o, qry_o, rel0, rel1 = jax.block_until_ready(
        cecm_forward(support, query, layer_params, layer_names))

    rs, rq, rr0, rr1 = _ref_cecm(support, query, layer_params, layer_names)
    np.testing.assert_allclose(np.asarray(sup_o), np.asarray(rs), rtol=2e-2, atol=2e-3)
    np.testing.assert_allclose(np.asarray(qry_o), np.asarray(rq), rtol=2e-2, atol=2e-3)
    np.testing.assert_allclose(np.asarray(rel0), np.asarray(rr0), rtol=2e-2, atol=2e-3)
    np.testing.assert_allclose(np.asarray(rel1), np.asarray(rr1), rtol=2e-2, atol=2e-3)

    print("KERNEL_OK")
</pallas_src>

<mosaic_0001>
module attributes {stable_mosaic.version = 11 : i64} {
  func.func @_patch_cluster_kernel(%arg0: i32, %arg1: memref<1x32x16xf32, #tpu.memory_space<vmem>>, %arg2: memref<1x32x16xf32, #tpu.memory_space<vmem>>, %arg3: memref<32x32xf32, #tpu.memory_space<vmem>>, %arg4: memref<32x1xf32, #tpu.memory_space<vmem>>, %arg5: memref<32x32xf32, #tpu.memory_space<vmem>>, %arg6: memref<32x1xf32, #tpu.memory_space<vmem>>, %arg7: memref<32x32xf32, #tpu.memory_space<vmem>>, %arg8: memref<32x1xf32, #tpu.memory_space<vmem>>, %arg9: memref<32x32xf32, #tpu.memory_space<vmem>>, %arg10: memref<32x1xf32, #tpu.memory_space<vmem>>, %arg11: memref<64x32xf32, #tpu.memory_space<vmem>>, %arg12: memref<64x32xf32, #tpu.memory_space<vmem>>, %arg13: memref<64x1xf32, #tpu.memory_space<vmem>>, %arg14: memref<32x64xf32, #tpu.memory_space<vmem>>, %arg15: memref<32x1xf32, #tpu.memory_space<vmem>>, %arg16: memref<1x32x16xf32, #tpu.memory_space<vmem>>, %arg17: memref<1x1x16xf32, #tpu.memory_space<vmem>>) attributes {dimension_semantics = [#tpu.dimension_semantics<parallel>], iteration_bounds = array<i64: 4>, scalar_prefetch = 0 : i64, scratch_operands = 0 : i64, tpu.core_type = #tpu.core_type<tc>, window_params = [{transform_indices = @transform_0, window_bounds = array<i64: 1, 32, 16>}, {transform_indices = @transform_1, window_bounds = array<i64: 1, 32, 16>}, {pipeline_mode = #tpu.pipeline_mode<synchronous>, transform_indices = @transform_2, window_bounds = array<i64: 32, 32>}, {pipeline_mode = #tpu.pipeline_mode<synchronous>, transform_indices = @transform_3, window_bounds = array<i64: 32, 1>}, {pipeline_mode = #tpu.pipeline_mode<synchronous>, transform_indices = @transform_4, window_bounds = array<i64: 32, 32>}, {pipeline_mode = #tpu.pipeline_mode<synchronous>, transform_indices = @transform_5, window_bounds = array<i64: 32, 1>}, {pipeline_mode = #tpu.pipeline_mode<synchronous>, transform_indices = @transform_6, window_bounds = array<i64: 32, 32>}, {pipeline_mode = #tpu.pipeline_mode<synchronous>, transform_indices = @transform_7, window_bounds = array<i64: 32, 1>}, {pipeline_mode = #tpu.pipeline_mode<synchronous>, transform_indices = @transform_8, window_bounds = array<i64: 32, 32>}, {pipeline_mode = #tpu.pipeline_mode<synchronous>, transform_indices = @transform_9, window_bounds = array<i64: 32, 1>}, {pipeline_mode = #tpu.pipeline_mode<synchronous>, transform_indices = @transform_10, window_bounds = array<i64: 64, 32>}, {pipeline_mode = #tpu.pipeline_mode<synchronous>, transform_indices = @transform_11, window_bounds = array<i64: 64, 32>}, {pipeline_mode = #tpu.pipeline_mode<synchronous>, transform_indices = @transform_12, window_bounds = array<i64: 64, 1>}, {pipeline_mode = #tpu.pipeline_mode<synchronous>, transform_indices = @transform_13, window_bounds = array<i64: 32, 64>}, {pipeline_mode = #tpu.pipeline_mode<synchronous>, transform_indices = @transform_14, window_bounds = array<i64: 32, 1>}, {transform_indices = @transform_15, window_bounds = array<i64: 1, 32, 16>}, {transform_indices = @transform_16, window_bounds = array<i64: 1, 1, 16>}]} {
    %c0 = arith.constant 0 : index
    %c0_0 = arith.constant 0 : index
    %c0_1 = arith.constant 0 : index
    %0 = vector.load %arg1[%c0, %c0_0, %c0_1] : memref<1x32x16xf32, #tpu.memory_space<vmem>>, vector<1x32x16xf32>
    %1 = vector.shape_cast %0 : vector<1x32x16xf32> to vector<32x16xf32>
    %c0_2 = arith.constant 0 : index
    %c0_3 = arith.constant 0 : index
    %c0_4 = arith.constant 0 : index
    %2 = vector.load %arg2[%c0_2, %c0_3, %c0_4] : memref<1x32x16xf32, #tpu.memory_space<vmem>>, vector<1x32x16xf32>
    %3 = vector.shape_cast %2 : vector<1x32x16xf32> to vector<32x16xf32>
    %c0_5 = arith.constant 0 : index
    %c0_6 = arith.constant 0 : index
    %4 = vector.load %arg3[%c0_5, %c0_6] : memref<32x32xf32, #tpu.memory_space<vmem>>, vector<32x32xf32>
    %cst = arith.constant dense<0.000000e+00> : vector<32x16xf32>
    %5 = tpu.matmul %4, %1, %cst {dimension_numbers = #tpu.dot_dimension_numbers<[1], [0], [0], [1], [0, 0, 1, 1], [], []>} : vector<32x32xf32>, vector<32x16xf32>, vector<32x16xf32> -> vector<32x16xf32>
    %c0_7 = arith.constant 0 : index
    %c0_8 = arith.constant 0 : index
    %6 = vector.load %arg4[%c0_7, %c0_8] : memref<32x1xf32, #tpu.memory_space<vmem>>, vector<32x1xf32>
    %7 = vector.broadcast %6 : vector<32x1xf32> to vector<32x16xf32>
    %8 = arith.addf %5, %7 : vector<32x16xf32>
    %c0_9 = arith.constant 0 : index
    %c0_10 = arith.constant 0 : index
    %9 = vector.load %arg5[%c0_9, %c0_10] : memref<32x32xf32, #tpu.memory_space<vmem>>, vector<32x32xf32>
    %cst_11 = arith.constant dense<0.000000e+00> : vector<32x16xf32>
    %10 = tpu.matmul %9, %3, %cst_11 {dimension_numbers = #tpu.dot_dimension_numbers<[1], [0], [0], [1], [0, 0, 1, 1], [], []>} : vector<32x32xf32>, vector<32x16xf32>, vector<32x16xf32> -> vector<32x16xf32>
    %c0_12 = arith.constant 0 : index
    %c0_13 = arith.constant 0 : index
    %11 = vector.load %arg6[%c0_12, %c0_13] : memref<32x1xf32, #tpu.memory_space<vmem>>, vector<32x1xf32>
    %12 = vector.broadcast %11 : vector<32x1xf32> to vector<32x16xf32>
    %13 = arith.addf %10, %12 : vector<32x16xf32>
    %c0_14 = arith.constant 0 : index
    %c0_15 = arith.constant 0 : index
    %14 = vector.load %arg7[%c0_14, %c0_15] : memref<32x32xf32, #tpu.memory_space<vmem>>, vector<32x32xf32>
    %cst_16 = arith.constant dense<0.000000e+00> : vector<32x16xf32>
    %15 = tpu.matmul %14, %3, %cst_16 {dimension_numbers = #tpu.dot_dimension_numbers<[1], [0], [0], [1], [0, 0, 1, 1], [], []>} : vector<32x32xf32>, vector<32x16xf32>, vector<32x16xf32> -> vector<32x16xf32>
    %c0_17 = arith.constant 0 : index
    %c0_18 = arith.constant 0 : index
    %16 = vector.load %arg8[%c0_17, %c0_18] : memref<32x1xf32, #tpu.memory_space<vmem>>, vector<32x1xf32>
    %17 = vector.broadcast %16 : vector<32x1xf32> to vector<32x16xf32>
    %18 = arith.addf %15, %17 : vector<32x16xf32>
    %19 = vector.shape_cast %8 : vector<32x16xf32> to vector<4x8x16xf32>
    %20 = vector.shape_cast %13 : vector<32x16xf32> to vector<4x8x16xf32>
    %21 = vector.shape_cast %18 : vector<32x16xf32> to vector<4x8x16xf32>
    %cst_19 = arith.constant dense<0.000000e+00> : vector<4x16x16xf32>
    %22 = tpu.matmul %19, %20, %cst_19 {dimension_numbers = #tpu.dot_dimension_numbers<[1], [1], [2], [2], [0, 0, 0, 2, 1, 2], [0], [0]>} : vector<4x8x16xf32>, vector<4x8x16xf32>, vector<4x16x16xf32> -> vector<4x16x16xf32>
    %cst_20 = arith.constant dense<0xFF800000> : vector<4x16xf32>
    %23 = vector.multi_reduction <maximumf>, %22, %cst_20 [2] : vector<4x16x16xf32> to vector<4x16xf32>
    %24 = vector.shape_cast %23 : vector<4x16xf32> to vector<4x16x1xf32>
    %25 = vector.broadcast %24 : vector<4x16x1xf32> to vector<4x16x16xf32>
    %26 = arith.subf %22, %25 : vector<4x16x16xf32>
    %27 = math.exp %26 : vector<4x16x16xf32>
    %cst_21 = arith.constant dense<0.000000e+00> : vector<4x16xf32>
    %28 = vector.multi_reduction <add>, %27, %cst_21 [2] : vector<4x16x16xf32> to vector<4x16xf32>
    %29 = vector.shape_cast %28 : vector<4x16xf32> to vector<4x16x1xf32>
    %30 = vector.broadcast %29 : vector<4x16x1xf32> to vector<4x16x16xf32>
    %31 = arith.divf %27, %30 : vector<4x16x16xf32>
    %cst_22 = arith.constant dense<0.000000e+00> : vector<4x8x16xf32>
    %32 = tpu.matmul %21, %31, %cst_22 {dimension_numbers = #tpu.dot_dimension_numbers<[2], [2], [1], [1], [0, 0, 0, 1, 1, 1], [0], [0]>} : vector<4x8x16xf32>, vector<4x16x16xf32>, vector<4x8x16xf32> -> vector<4x8x16xf32>
    %33 = vector.shape_cast %32 : vector<4x8x16xf32> to vector<32x16xf32>
    %c0_23 = arith.constant 0 : index
    %c0_24 = arith.constant 0 : index
    %34 = vector.load %arg9[%c0_23, %c0_24] : memref<32x32xf32, #tpu.memory_space<vmem>>, vector<32x32xf32>
    %cst_25 = arith.constant dense<0.000000e+00> : vector<32x16xf32>
    %35 = tpu.matmul %34, %33, %cst_25 {dimension_numbers = #tpu.dot_dimension_numbers<[1], [0], [0], [1], [0, 0, 1, 1], [], []>} : vector<32x32xf32>, vector<32x16xf32>, vector<32x16xf32> -> vector<32x16xf32>
    %c0_26 = arith.constant 0 : index
    %c0_27 = arith.constant 0 : index
    %36 = vector.load %arg10[%c0_26, %c0_27] : memref<32x1xf32, #tpu.memory_space<vmem>>, vector<32x1xf32>
    %37 = vector.broadcast %36 : vector<32x1xf32> to vector<32x16xf32>
    %38 = arith.addf %35, %37 : vector<32x16xf32>
    %c0_28 = arith.constant 0 : index
    %c0_29 = arith.constant 0 : index
    %39 = vector.load %arg11[%c0_28, %c0_29] : memref<64x32xf32, #tpu.memory_space<vmem>>, vector<64x32xf32>
    %cst_30 = arith.constant dense<0.000000e+00> : vector<64x16xf32>
    %40 = tpu.matmul %39, %1, %cst_30 {dimension_numbers = #tpu.dot_dimension_numbers<[1], [0], [0], [1], [0, 0, 1, 1], [], []>} : vector<64x32xf32>, vector<32x16xf32>, vector<64x16xf32> -> vector<64x16xf32>
    %c0_31 = arith.constant 0 : index
    %c0_32 = arith.constant 0 : index
    %41 = vector.load %arg12[%c0_31, %c0_32] : memref<64x32xf32, #tpu.memory_space<vmem>>, vector<64x32xf32>
    %cst_33 = arith.constant dense<0.000000e+00> : vector<64x16xf32>
    %42 = tpu.matmul %41, %38, %cst_33 {dimension_numbers = #tpu.dot_dimension_numbers<[1], [0], [0], [1], [0, 0, 1, 1], [], []>} : vector<64x32xf32>, vector<32x16xf32>, vector<64x16xf32> -> vector<64x16xf32>
    %43 = arith.addf %40, %42 : vector<64x16xf32>
    %c0_34 = arith.constant 0 : index
    %c0_35 = arith.constant 0 : index
    %44 = vector.load %arg13[%c0_34, %c0_35] : memref<64x1xf32, #tpu.memory_space<vmem>>, vector<64x1xf32>
    %45 = vector.broadcast %44 : vector<64x1xf32> to vector<64x16xf32>
    %46 = arith.addf %43, %45 : vector<64x16xf32>
    %cst_36 = arith.constant 0.000000e+00 : f32
    %47 = vector.broadcast %cst_36 : f32 to vector<64x16xf32>
    %48 = arith.maximumf %46, %47 : vector<64x16xf32>
    %c0_37 = arith.constant 0 : index
    %c0_38 = arith.constant 0 : index
    %49 = vector.load %arg14[%c0_37, %c0_38] : memref<32x64xf32, #tpu.memory_space<vmem>>, vector<32x64xf32>
    %cst_39 = arith.constant dense<0.000000e+00> : vector<32x16xf32>
    %50 = tpu.matmul %49, %48, %cst_39 {dimension_numbers = #tpu.dot_dimension_numbers<[1], [0], [0], [1], [0, 0, 1, 1], [], []>} : vector<32x64xf32>, vector<64x16xf32>, vector<32x16xf32> -> vector<32x16xf32>
    %c0_40 = arith.constant 0 : index
    %c0_41 = arith.constant 0 : index
    %51 = vector.load %arg15[%c0_40, %c0_41] : memref<32x1xf32, #tpu.memory_space<vmem>>, vector<32x1xf32>
    %52 = vector.broadcast %51 : vector<32x1xf32> to vector<32x16xf32>
    %53 = arith.addf %50, %52 : vector<32x16xf32>
    %54 = arith.mulf %1, %53 : vector<32x16xf32>
    %cst_42 = arith.constant dense<0.000000e+00> : vector<16xf32>
    %55 = vector.multi_reduction <add>, %54, %cst_42 [0] : vector<32x16xf32> to vector<16xf32>
    %56 = vector.shape_cast %55 : vector<16xf32> to vector<1x16xf32>
    %57 = arith.mulf %1, %1 : vector<32x16xf32>
    %cst_43 = arith.constant dense<0.000000e+00> : vector<16xf32>
    %58 = vector.multi_reduction <add>, %57, %cst_43 [0] : vector<32x16xf32> to vector<16xf32>
    %59 = vector.shape_cast %58 : vector<16xf32> to vector<1x16xf32>
    %60 = math.sqrt %59 : vector<1x16xf32>
    %cst_44 = arith.constant 9.99999974E-6 : f32
    %61 = vector.broadcast %cst_44 : f32 to vector<1x16xf32>
    %62 = arith.addf %60, %61 : vector<1x16xf32>
    %63 = arith.mulf %53, %53 : vector<32x16xf32>
    %cst_45 = arith.constant dense<0.000000e+00> : vector<16xf32>
    %64 = vector.multi_reduction <add>, %63, %cst_45 [0] : vector<32x16xf32> to vector<16xf32>
    %65 = vector.shape_cast %64 : vector<16xf32> to vector<1x16xf32>
    %66 = math.sqrt %65 : vector<1x16xf32>
    %cst_46 = arith.constant 9.99999974E-6 : f32
    %67 = vector.broadcast %cst_46 : f32 to vector<1x16xf32>
    %68 = arith.addf %66, %67 : vector<1x16xf32>
    %69 = arith.mulf %62, %68 : vector<1x16xf32>
    %70 = arith.divf %56, %69 : vector<1x16xf32>
    %c0_47 = arith.constant 0 : index
    %c0_48 = arith.constant 0 : index
    %c0_49 = arith.constant 0 : index
    %71 = vector.load %arg17[%c0_47, %c0_48, %c0_49] : memref<1x1x16xf32, #tpu.memory_space<vmem>>, vector<1x1x16xf32>
    %72 = vector.shape_cast %71 : vector<1x1x16xf32> to vector<1x16xf32>
    %73 = vector.shape_cast %70 : vector<1x16xf32> to vector<1x1x16xf32>
    tpu.vector_store %arg17[%c0_47, %c0_48, %c0_49], %73 {strides = array<i32>} : memref<1x1x16xf32, #tpu.memory_space<vmem>>, vector<1x1x16xf32>,
    %cst_50 = arith.constant 4.000000e+01 : f32
    %74 = vector.broadcast %cst_50 : f32 to vector<1x16xf32>
    %75 = arith.mulf %70, %74 : vector<1x16xf32>
    %76 = math.exp %75 : vector<1x16xf32>
    %cst_51 = arith.constant dense<0.000000e+00> : vector<1xf32>
    %77 = vector.multi_reduction <add>, %76, %cst_51 [1] : vector<1x16xf32> to vector<1xf32>
    %78 = vector.shape_cast %77 : vector<1xf32> to vector<1x1xf32>
    %79 = tpu.reciprocal %78 {approx = true} : vector<1x1xf32> -> vector<1x1xf32>
    %80 = vector.broadcast %79 : vector<1x1xf32> to vector<1x16xf32>
    %81 = arith.mulf %76, %80 : vector<1x16xf32>
    %cst_52 = arith.constant 1.000000e+00 : f32
    %82 = vector.broadcast %cst_52 : f32 to vector<1x16xf32>
    %83 = arith.addf %81, %82 : vector<1x16xf32>
    %84 = vector.broadcast %83 : vector<1x16xf32> to vector<32x16xf32>
    %85 = arith.mulf %1, %84 : vector<32x16xf32>
    %c0_53 = arith.constant 0 : index
    %c0_54 = arith.constant 0 : index
    %c0_55 = arith.constant 0 : index
    %86 = vector.load %arg16[%c0_53, %c0_54, %c0_55] : memref<1x32x16xf32, #tpu.memory_space<vmem>>, vector<1x32x16xf32>
    %87 = vector.shape_cast %86 : vector<1x32x16xf32> to vector<32x16xf32>
    %88 = vector.shape_cast %85 : vector<32x16xf32> to vector<1x32x16xf32>
    tpu.vector_store %arg16[%c0_53, %c0_54, %c0_55], %88 {strides = array<i32>} : memref<1x32x16xf32, #tpu.memory_space<vmem>>, vector<1x32x16xf32>,
    return
  }
  func.func @transform_0(%arg0: i32) -> (i32, i32, i32) {
    %c0_i32 = arith.constant 0 : i32
    %c0_i32_0 = arith.constant 0 : i32
    %c0_i32_1 = arith.constant 0 : i32
    return %arg0, %c0_i32, %c0_i32_0 : i32, i32, i32
  }
  func.func @transform_1(%arg0: i32) -> (i32, i32, i32) {
    %c0_i32 = arith.constant 0 : i32
    %c0_i32_0 = arith.constant 0 : i32
    %c0_i32_1 = arith.constant 0 : i32
    return %arg0, %c0_i32, %c0_i32_0 : i32, i32, i32
  }
  func.func @transform_2(%arg0: i32) -> (i32, i32) {
    %c0_i32 = arith.constant 0 : i32
    %c0_i32_0 = arith.constant 0 : i32
    %c0_i32_1 = arith.constant 0 : i32
    return %c0_i32, %c0_i32_0 : i32, i32
  }
  func.func @transform_3(%arg0: i32) -> (i32, i32) {
    %c0_i32 = arith.constant 0 : i32
    %c0_i32_0 = arith.constant 0 : i32
    %c0_i32_1 = arith.constant 0 : i32
    return %c0_i32, %c0_i32_0 : i32, i32
  }
  func.func @transform_4(%arg0: i32) -> (i32, i32) {
    %c0_i32 = arith.constant 0 : i32
    %c0_i32_0 = arith.constant 0 : i32
    %c0_i32_1 = arith.constant 0 : i32
    return %c0_i32, %c0_i32_0 : i32, i32
  }
  func.func @transform_5(%arg0: i32) -> (i32, i32) {
    %c0_i32 = arith.constant 0 : i32
    %c0_i32_0 = arith.constant 0 : i32
    %c0_i32_1 = arith.constant 0 : i32
    return %c0_i32, %c0_i32_0 : i32, i32
  }
  func.func @transform_6(%arg0: i32) -> (i32, i32) {
    %c0_i32 = arith.constant 0 : i32
    %c0_i32_0 = arith.constant 0 : i32
    %c0_i32_1 = arith.constant 0 : i32
    return %c0_i32, %c0_i32_0 : i32, i32
  }
  func.func @transform_7(%arg0: i32) -> (i32, i32) {
    %c0_i32 = arith.constant 0 : i32
    %c0_i32_0 = arith.constant 0 : i32
    %c0_i32_1 = arith.constant 0 : i32
    return %c0_i32, %c0_i32_0 : i32, i32
  }
  func.func @transform_8(%arg0: i32) -> (i32, i32) {
    %c0_i32 = arith.constant 0 : i32
    %c0_i32_0 = arith.constant 0 : i32
    %c0_i32_1 = arith.constant 0 : i32
    return %c0_i32, %c0_i32_0 : i32, i32
  }
  func.func @transform_9(%arg0: i32) -> (i32, i32) {
    %c0_i32 = arith.constant 0 : i32
    %c0_i32_0 = arith.constant 0 : i32
    %c0_i32_1 = arith.constant 0 : i32
    return %c0_i32, %c0_i32_0 : i32, i32
  }
  func.func @transform_10(%arg0: i32) -> (i32, i32) {
    %c0_i32 = arith.constant 0 : i32
    %c0_i32_0 = arith.constant 0 : i32
    %c0_i32_1 = arith.constant 0 : i32
    return %c0_i32, %c0_i32_0 : i32, i32
  }
  func.func @transform_11(%arg0: i32) -> (i32, i32) {
    %c0_i32 = arith.constant 0 : i32
    %c0_i32_0 = arith.constant 0 : i32
    %c0_i32_1 = arith.constant 0 : i32
    return %c0_i32, %c0_i32_0 : i32, i32
  }
  func.func @transform_12(%arg0: i32) -> (i32, i32) {
    %c0_i32 = arith.constant 0 : i32
    %c0_i32_0 = arith.constant 0 : i32
    %c0_i32_1 = arith.constant 0 : i32
    return %c0_i32, %c0_i32_0 : i32, i32
  }
  func.func @transform_13(%arg0: i32) -> (i32, i32) {
    %c0_i32 = arith.constant 0 : i32
    %c0_i32_0 = arith.constant 0 : i32
    %c0_i32_1 = arith.constant 0 : i32
    return %c0_i32, %c0_i32_0 : i32, i32
  }
  func.func @transform_14(%arg0: i32) -> (i32, i32) {
    %c0_i32 = arith.constant 0 : i32
    %c0_i32_0 = arith.constant 0 : i32
    %c0_i32_1 = arith.constant 0 : i32
    return %c0_i32, %c0_i32_0 : i32, i32
  }
  func.func @transform_15(%arg0: i32) -> (i32, i32, i32) {
    %c0_i32 = arith.constant 0 : i32
    %c0_i32_0 = arith.constant 0 : i32
    %c0_i32_1 = arith.constant 0 : i32
    return %arg0, %c0_i32, %c0_i32_0 : i32, i32, i32
  }
  func.func @transform_16(%arg0: i32) -> (i32, i32, i32) {
    %c0_i32 = arith.constant 0 : i32
    %c0_i32_0 = arith.constant 0 : i32
    %c0_i32_1 = arith.constant 0 : i32
    return %arg0, %c0_i32, %c0_i32_0 : i32, i32, i32
  }
}

</mosaic_0001>

<bundles_post_ra>
// kernel: tpu_custom_call.1
= control target key start
LH: loop header
LB: loop body
LE: loop exit
PB: predicated region body
PF: predicated region fallthrough
CT: control target
= control target key end

     0   :  { %s3647_s0 = inlined_call_operand.vmem [shape: f32[4,32,16], index: 0, kind: input, shape index: {}]   ;;  %s3648_s1 = inlined_call_operand.vmem [shape: f32[4,32,16], index: 1, kind: input, shape index: {}]   ;;  %s3649_s2 = inlined_call_operand.vmem [shape: f32[32,32], index: 2, kind: input, shape index: {}]   ;;  %s3650_s3 = inlined_call_operand.vmem [shape: f32[32,1], index: 3, kind: input, shape index: {}]   ;;  %s3651_s4 = inlined_call_operand.vmem [shape: f32[32,32], index: 4, kind: input, shape index: {}]   ;;  %s3652_s5 = inlined_call_operand.vmem [shape: f32[32,1], index: 5, kind: input, shape index: {}]   ;;  %s3653_s6 = inlined_call_operand.vmem [shape: f32[32,32], index: 6, kind: input, shape index: {}]   ;;  %s3654_s7 = inlined_call_operand.vmem [shape: f32[32,1], index: 7, kind: input, shape index: {}]   ;;  %s3655_s8 = inlined_call_operand.vmem [shape: f32[32,32], index: 8, kind: input, shape index: {}]   ;;  %s3656_s9 = inlined_call_operand.vmem [shape: f32[32,1], index: 9, kind: input, shape index: {}]   ;;  %s3657_s10 = inlined_call_operand.vmem [shape: f32[64,32], index: 10, kind: input, shape index: {}]   ;;  %s3658_s11 = inlined_call_operand.vmem [shape: f32[64,32], index: 11, kind: input, shape index: {}]   ;;  %s3659_s12 = inlined_call_operand.vmem [shape: f32[64,1], index: 12, kind: input, shape index: {}]   ;;  %s3660_s13 = inlined_call_operand.vmem [shape: f32[32,64], index: 13, kind: input, shape index: {}]   ;;  %s3661_s14 = inlined_call_operand.vmem [shape: f32[32,1], index: 14, kind: input, shape index: {}]   ;;  %s3662_s15 = inlined_call_operand.vmem [shape: f32[4,32,16], index: 15, kind: output, shape index: {0}]   ;;  %s3663_s16 = inlined_call_operand.hbm [shape: f32[4,1,16], index: 16, kind: output, shape index: {1}]  }
   0x1   :  { %3669 = sst [smem:[#allocation10_spill]] %s3647_s0 }
   0x2   :  { %3670 = sst [smem:[#allocation11_spill]] %s3648_s1 }
   0x3   :  { %3671 = sst [smem:[#allocation12_spill]] %s3649_s2 }
   0x4   :  { %3672 = sst [smem:[#allocation13_spill]] %s3650_s3 }
   0x5   :  { %22 = vsyncpa [#allocation3], 0 }
   0x6   :  { %24 = vsyncpa [#allocation3 + $0x1], 0  ;;  %s3156_s21 = smov 0   ;;  %s3158_s22 = smov 0  }
   0x7   :  { %s3160_s23 = smov 0   ;;  %s3162_s24 = smov 0  }
   0x8 LB: > { %3673 = sst [smem:[#allocation5_spill]] %s3053_s21  ;;  %s3177_s25 = sadd.s32 4294967295, %s3065_s24   ;;  %s3065_s24 = sphi %s3162_s24, %s3686_s24   ;;  %s3061_s23 = sphi %s3160_s23, %s3688_s23   ;;  %s3057_s22 = sphi %s3158_s22, %s3690_s22   ;;  %s3053_s21 = sphi %s3156_s21, %s3689_s21  }
   0x9   : > { %3674 = sst [smem:[#allocation6_spill]] %s3061_s23  ;;  %s2585_s26 = sadd.s32 4294967294, %s3065_s24  }
   0xa   : > { %s3181_s27 = sadd.s32 1, %s3065_s24   ;;  %s388_s28 = sadd.s32 1, %s3061_s23 }
   0xb   : > { %3675 = sst [smem:[#allocation7_spill]] %s3181_s27  ;;  %s385_s29 = ssub.s32 %s3065_s24, %s3181_s27 }
   0xc   : > { %p398_p0 = scmp.ne.s32.totalorder %s3061_s23, %s3057_s22  ;;  %p386_p1 = scmp.eq.s32.totalorder %s385_s29, 0 }
   0xd   : > { %p399_p2 = scmp.eq.s32.totalorder %s3177_s25, 3  ;;  %p404_p3 = scmp.ne.s32.totalorder %s3057_s22, %s3053_s21 }
   0xe   : > { %p405_p4 = scmp.eq.s32.totalorder %s2585_s26, 3  ;;  %p2588_p7 = scmp.ge.s32.totalorder %s3065_s24, 1 }
   0xf   : > { %s3192_s30 = scalar_select %p386_p1, %s3061_s23, %s388_s28  }
  0x10   : > { %p3194_p5 = por %p399_p2, %p398_p0  ;;  %p3198_p6 = por %p405_p4, %p404_p3 }
  0x11   : > { %3676 = sst [smem:[#allocation8_spill]] %s3192_s30  ;;  %p478_p8 = scmp.lt.s32.totalorder %s3065_s24, 5 }
  0x12   : > { %s3678_s17 = scalar_select %p3198_p6, 1, 0 }
  0x13   : > { %p479_p9 = pnand %p2588_p7, %p478_p8 }
  0x14   : > { %3679 = sst [smem:[#allocation9_spill]] %s3678_s17  ;;  %p537_p10 = scmp.lt.s32.totalorder (!%p479_p9), %s3177_s25, 3 }
  0x15   : > { %482 = sbr.rel (%p479_p9) target bundleno = 1964 (0x7ac), region = 80  ;;  %s3680_s2 = sld [smem:[#allocation12_spill]] (!%p479_p9) }
  0x16   : > { %s3681_s3 = sld [smem:[#allocation13_spill]] (!%p479_p9)  ;;  %s2651_s20 = sshll.u32 (!%p479_p9), %s3177_s25, 4 }
  0x17   : > { %s3682_s21 = sld [smem:[#allocation10_spill]] (!%p479_p9)  ;;  %s3070_s17 = smov (!%p479_p9), [#allocation2]  }
  0x18   : > { %s3683_s1 = sld [smem:[#allocation11_spill]] (!%p479_p9) }
  0x1a   : > { %vm588_vm0 = vcmask 261120   ;;  %v686_v1 = vld [vmem:[%s3651_s4] sm:$0xff]  ;;  %s538_s28 = scalar_select %p537_p10, %s3177_s25, 3  ;;  %v3067_v2 = vmov 0   ;;  %v687_v15 = vld [vmem:[%s3651_s4 + $0x8] sm:$0xff]  ;;  %v688_v17 = vld [vmem:[%s3651_s4 + $0x10] sm:$0xff] }
  0x1b   : > { %v560_v0 = vld [vmem:[%s3680_s2] sm:$0xff]  ;;  %2771 = vmatprep.mubr.msk.f32.mxu1 %vm588_vm0, %v686_v1  ;;  %2957 = vset.pattern.permute.xlu0 %v3067_v2  ;;  %v561_v14 = vld [vmem:[%s3680_s2 + $0x8] sm:$0xff]  ;;  %v562_v16 = vld [vmem:[%s3680_s2 + $0x10] sm:$0xff]  ;;  %vm968_vm1 = vcmask 64512   ;;  %vm1389_vm2 = vcmask 130048   ;;  %vm3069_vm3 = vmmov 0  }
  0x1c   : > { %2757 = vmatprep.mubr.msk.f32.mxu0 %vm588_vm0, %v560_v0  ;;  %v564_v3 = vld [vmem:[%s3681_s3] sm:$0xff]  ;;  %2958 = vset.pattern.permute.xlu1 %v3067_v2  ;;  %v567_v4 = vld [vmem:[%s3681_s3 + $0x18] sm:$0xff]  ;;  %s3220_s23 = sshll.u32 %s538_s28, 5  ;;  %v565_v5 = vld [vmem:[%s3681_s3 + $0x8] sm:$0xff]  ;;  %vm2285_vm4 = vcmask 523264   ;;  %vm2453_vm9 = vcmask 122880  }
  0x1d   : > { %570 = vperm.xlu0 %2957, %v564_v3   ;;  %585 = vperm.xlu1 %2958, %v567_v4   ;;  %s3229_s30 = scalar_lea.vmem %s3682_s21, %s3220_s23  ;;  %v690_v18 = vld [vmem:[%s3652_s5] sm:$0xff]  ;;  %v566_v19 = vld [vmem:[%s3681_s3 + $0x10] sm:$0xff]  ;;  %v563_v20 = vld [vmem:[%s3680_s2 + $0x18] sm:$0xff]  ;;  %s3009_s2 = sshll.u32 %s3070_s17, 4  ;;  %s3010_s2 = int_to_ptr.vmem [resolvable:$false] %s3009_s2 }
  0x1e   : > { %v3232_v6 = vld [vmem:[%s3229_s30 + $0x18] sm:$0xff]  ;;  %s546_s18 = scalar_lea.vmem %s3683_s1, %s3220_s23  ;;  %v3239_v7 = vld [vmem:[%s3229_s30 + $0x10] sm:$0xff]  ;;  %v3244_v10 = vld [vmem:[%s3229_s30 + $0x8] sm:$0xff]  ;;  %s535_s1 = sand.u32 1, %s3057_s22  }
  0x1f   : > { %2749 = vmatprep.subr.mxu0 %v3232_v6  ;;  %v559_v8 = vld [vmem:[%s546_s18 + $0x18] sm:$0xff]  ;;  %v558_v9 = vld [vmem:[%s546_s18 + $0x10] sm:$0xff]  ;;  %v557_v11 = vld [vmem:[%s546_s18 + $0x8] sm:$0xff]  ;;  %s536_s19 = scalar_lea.vmem [#allocation2], %s535_s1  ;;  %s2478_s21 = scalar_lea.sflag [#allocation3], %s535_s1 }
  0x20   : > { %2763 = vmatprep.subr.mxu1 %v559_v8  ;;  %2750 = vmatpush3.msra.mxu0 %v3232_v6  ;;  %v3249_v12 = vld [vmem:[%s3229_s30] sm:$0xff]  ;;  %v689_v21 = vld [vmem:[%s3651_s4 + $0x18] sm:$0xff]  ;;  %v691_v23 = vld [vmem:[%s3652_s5 + $0x8] sm:$0xff]  ;;  %s2493_s26 = sshll.u32 %s536_s19, 4  ;;  %s3011_s3 = scalar_lea.vmem %s3010_s2, 32  ;;  %s2494_s26 = int_to_ptr.vmem [resolvable:$true] %s2493_s26 }
  0x21   : > { %575 = vperm.xlu0 %2957, %v565_v5   ;;  %2764 = vmatpush3.msra.mxu1 %v559_v8  ;;  %v556_v13 = vld [vmem:[%s546_s18] sm:$0xff]  ;;  %v693_v22 = vld [vmem:[%s3652_s5 + $0x18] sm:$0xff]  ;;  %v692_v24 = vld [vmem:[%s3652_s5 + $0x10] sm:$0xff]  ;;  %s2491_s18 = scalar_lea.hbm %s3663_s16, %s2651_s20  ;;  %s3005_s27 = scalar_lea.vmem %s2494_s26, 16 }
  0x22   : > { %2751 = vmatprep.subr.mxu0 %v3239_v7  ;;  %2765 = vmatprep.subr.mxu1 %v558_v9  ;;  %v811_v25 = vld [vmem:[%s3653_s6] sm:$0xff]  ;;  %v812_v26 = vld [vmem:[%s3653_s6 + $0x8] sm:$0xff]  ;;  %v813_v49 = vld [vmem:[%s3653_s6 + $0x10] sm:$0xff]  ;;  %p3006_p11 = scmp.ne.s32.totalorder %s2494_s26, %s3005_s27  ;;  %p3012_p0 = scmp.lt.s32.totalorder %s2494_s26, %s3010_s2 }
  0x23   : > { %2752 = vmatpush3.msra.mxu0 %v3239_v7  ;;  %2766 = vmatpush3.msra.mxu1 %v558_v9  ;;  %v814_v50 = vld [vmem:[%s3653_s6 + $0x18] sm:$0xff]  ;;  %p3013_p1 = scmp.lt.s32.totalorder %s3011_s3, %s3005_s27 }
  0x24   : > { %2753 = vmatprep.subr.mxu0 %v3244_v10  ;;  %2767 = vmatprep.subr.mxu1 %v557_v11  ;;  %p3007_p12 = pnand %p3006_p11, %p3194_p5 }
  0x25   : > { %2754 = vmatpush3.msra.mxu0 %v3244_v10  ;;  %2768 = vmatpush3.msra.mxu1 %v557_v11  ;;  %p3014_p2 = por %p3013_p1, %p3012_p0 }
  0x26   : > { %2755 = vmatprep.subr.mxu0 %v3249_v12  ;;  %2769 = vmatprep.subr.mxu1 %v556_v13  ;;  %p3008_p13 = pneg %p3007_p12 }
  0x27   : > { %2756 = vmatpush3.msra.mxu0 %v3249_v12  ;;  %2770 = vmatpush3.msra.mxu1 %v556_v13 }
  0x28   : > { %2758 = vmatmul.mubr.msk.f32.vlgmr.msra.gmra.mxu0 %vm588_vm0, %v561_v14  ;;  %2772 = vmatmul.mubr.msk.f32.vlgmr.msra.gmra.mxu1 %vm588_vm0, %v687_v15  ;;  %p3015_p3 = pnand %p3014_p2, %p3008_p13 }
  0x29   : > { %2760 = vmatprep.mubr.msk.f32.mxu0 %vm588_vm0, %v562_v16  ;;  %2774 = vmatprep.mubr.msk.f32.mxu1 %vm588_vm0, %v688_v17 }
  0x2a   : > { %696 = vperm.xlu0 %2957, %v690_v18   ;;  %580 = vperm.xlu1 %2958, %v566_v19  }
  0x2b   : > { %2777 = vmatprep.subr.mxu0 %v559_v8 }
  0x2c   : > { %2761 = vmatmul.mubr.msk.f32.gmra.mxu0 %vm588_vm0, %v563_v20  ;;  %2775 = vmatmul.mubr.msk.f32.gmra.mxu1 %vm588_vm0, %v689_v21  ;;  %v816_v21 = vld [vmem:[%s3654_s7 + $0x8] sm:$0xff] }
  0x2d   : > { %2778 = vmatpush3.msra.mxu0 %v559_v8  ;;  %2785 = vmatprep.mubr.msk.f32.mxu0 %vm588_vm0, %v811_v25 }
  0x2e   : > { %711 = vperm.xlu0 %2957, %v693_v22   ;;  %2779 = vmatprep.subr.mxu0 %v558_v9  ;;  %v815_v22 = vld [vmem:[%s3654_s7] sm:$0xff] }
  0x2f   : > { %701 = vperm.xlu1 %2958, %v691_v23   ;;  %2780 = vmatpush3.msra.mxu0 %v558_v9 }
  0x30   : > { %2781 = vmatprep.subr.mxu0 %v557_v11 }
  0x31   : > { %2782 = vmatpush3.msra.mxu0 %v557_v11 }
  0x32   : > { %2783 = vmatprep.subr.mxu0 %v556_v13 }
  0x33   : > { %706 = vperm.xlu1 %2958, %v692_v24   ;;  %2784 = vmatpush3.msra.mxu0 %v556_v13 }
  0x34   : > { %2786 = vmatmul.mubr.msk.f32.vlgmr.msra.gmra.mxu0 %vm588_vm0, %v812_v26 }
  0x35   : > { %2788 = vmatprep.mubr.msk.f32.mxu0 %vm588_vm0, %v813_v49 }
  0x38   : > { %2789 = vmatmul.mubr.msk.f32.gmra.mxu0 %vm588_vm0, %v814_v50 }
  0x98   : > { %v586_v27 = vpop.permute.xlu1 %585  ;;  %v571_v28 = vpop.permute.xlu0 %570 }
  0x9c   : > { %v576_v30 = vpop.permute.xlu0 %575 }
  0xa5   : > { %v581_v29 = vpop.permute.xlu1 %580  ;;  %v697_v36 = vpop.permute.xlu0 %696 }
  0xa9   : > { %v712_v51 = vpop.permute.xlu0 %711 }
  0xaa   : > { %v702_v31 = vpop.permute.xlu1 %701 }
  0xae   : > { %v707_v43 = vpop.permute.xlu1 %706 }
  0xe8   : > { %v2759_v32 = vpop.f32.mrf.mxu0  ;;  %v2773_v34 = vpop.f32.mrf.mxu1 }
  0xe9   : > { %v673_v33 = vadd.f32 %v2759_v32, %v576_v30  ;;  %v798_v40 = vadd.f32 %v2773_v34, %v702_v31 }
  0xea   : > { %v667_v35 = vpop.f32.mrf.mxu0  ;;  %v792_v38 = vpop.f32.mrf.mxu1 }
  0xeb   : > { %v668_v37 = vadd.f32 %v667_v35, %v571_v28  ;;  %1050 = vxpose.xlu1.b32.start.end [1/1] (short) (narrow) %v673_v33, 16  ;;  %v793_v39 = vadd.f32 %v792_v38, %v697_v36 }
  0xec   : > { %v2762_v41 = vpop.f32.mrf.mxu0  ;;  %v2776_v42 = vpop.f32.mrf.mxu1 }
  0xed   : > { %936 = vxpose.xlu0.b32.start.end [1/1] (short) (narrow) %v668_v37, 16  ;;  %2791 = vmatprep.subr.mxu1 %v793_v39  ;;  %v683_v44 = vadd.f32 %v2762_v41, %v586_v27  ;;  %v808_v55 = vadd.f32 %v2776_v42, %v712_v51 }
  0xee   : > { %2792 = vmatpush3.msra.mxu1 %v793_v39  ;;  %v802_v45 = vpop.f32.mrf.mxu1  ;;  %v677_v47 = vpop.f32.mrf.mxu0 }
  0xef   : > { %v803_v46 = vadd.f32 %v802_v45, %v707_v43  ;;  %2796 = vmatprep.subr.mxu1 %v798_v40  ;;  %v678_v48 = vadd.f32 %v677_v47, %v581_v29 }
  0xf1   : > { %2801 = vmatprep.subr.mxu0 %v803_v46 }
  0xf2   : > { %1276 = vxpose.xlu0.b32.start.end [1/1] (short) (narrow) %v683_v44, 16  ;;  %2802 = vmatpush3.msra.mxu0 %v803_v46 }
  0xf4   : > { %v3319_v0 = vpop.f32.mrf.mxu0 }
  0xf6   : > { %v3322_v4 = vpop.f32.mrf.mxu0 }
  0xf7   : > { %1163 = vxpose.xlu0.b32.start.end [1/1] (short) (narrow) %v678_v48, 16 }
  0xf8   : > { %v3326_v11 = vpop.f32.mrf.mxu0 }
  0xfa   : > { %v3330_v16 = vpop.f32.mrf.mxu0 }
 0x167   : > { %v1066_v53 = vpop.trf.xlu1 }
 0x169   : > { %v952_v52 = vpop.trf.xlu0 }
 0x16a   : > { %2793 = vmatprep.mubr.msk.f32.mxu1 %vm968_vm1, %v952_v52 }
 0x16b   : > { %v1067_v56 = vpop.trf.xlu1 }
 0x16d   : > { %v953_v54 = vpop.trf.xlu0 }
 0x16e   : > { %2794 = vmatmul.mubr.msk.f32.vlgmr.msra.gmra.mxu1 %vm968_vm1, %v953_v54 }
 0x16f   : > { %2797 = vmatpush3.msra.mxu1 %v798_v40  ;;  %2798 = vmatprep.mubr.msk.f32.mxu1 %vm968_vm1, %v1066_v53 }
 0x170   : > { %2806 = vmatprep.subr.mxu1 %v808_v55 }
 0x171   : > { %v1292_v57 = vpop.trf.xlu0 }
 0x172   : > { %2799 = vmatmul.mubr.msk.f32.vlgmr.msra.gmra.mxu1 %vm968_vm1, %v1067_v56 }
 0x173   : > { %2807 = vmatpush3.msra.mxu1 %v808_v55  ;;  %2808 = vmatprep.mubr.msk.f32.mxu1 %vm968_vm1, %v1292_v57 }
 0x175   : > { %v1293_v58 = vpop.trf.xlu0 }
 0x176   : > { %2809 = vmatmul.mubr.msk.f32.vlgmr.msra.gmra.mxu1 %vm968_vm1, %v1293_v58 }
 0x179   : > { %v1179_v59 = vpop.trf.xlu0 }
 0x17a   : > { %2803 = vmatprep.mubr.msk.f32.mxu0 %vm968_vm1, %v1179_v59 }
 0x17d   : > { %v1180_v60 = vpop.trf.xlu0 }
 0x17e   : > { %2804 = vmatmul.mubr.msk.f32.vlgmr.msra.gmra.mxu0 %vm968_vm1, %v1180_v60 }
 0x22e   : > { %v2795_v61 = vpop.f32.mrf.mxu1 }
 0x22f   : > { %v1393_v62 = vsel %vm1389_vm2, %v2795_v61, -inf }
 0x230   : > { %1394 = vmax.xlane.f32.xlu1 %v1393_v62  ;;  %v1041_v63 = vpop.f32.mrf.mxu1 }
 0x231   : > { %v1390_v14 = vsel %vm1389_vm2, %v1041_v63, -inf }
 0x232   : > { %v2800_v1 = vpop.f32.mrf.mxu1 }
 0x233   : > { %v1399_v2 = vsel %vm1389_vm2, %v2800_v1, -inf }
 0x234   : > { %1400 = vmax.xlane.f32.xlu0 %v1399_v2  ;;  %v1154_v3 = vpop.f32.mrf.mxu1  ;;  %v817_v2 = vld [vmem:[%s3654_s7 + $0x10] sm:$0xff] }
 0x235   : > { %v1396_v5 = vsel %vm1389_vm2, %v1154_v3, -inf }
 0x236   : > { %1397 = vmax.xlane.f32.xlu1 %v1396_v5  ;;  %v2810_v8 = vpop.f32.mrf.mxu1  ;;  %v1800_v5 = vld [vmem:[%s3656_s9 + $0x10] sm:$0xff] }
 0x237   : > { %v1411_v9 = vsel %vm1389_vm2, %v2810_v8, -inf }
 0x238   : > { %1412 = vmax.xlane.f32.xlu0 %v1411_v9  ;;  %v1380_v13 = vpop.f32.mrf.mxu1  ;;  %v1798_v9 = vld [vmem:[%s3656_s9] sm:$0xff] }
 0x239   : > { %v1408_v15 = vsel %vm1389_vm2, %v1380_v13, -inf }
 0x23a   : > { %1391 = vmax.xlane.f32.xlu1 %v1390_v14  ;;  %v2199_v14 = vld [vmem:[%s3659_s12 + $0x30] sm:$0xff] }
 0x23c   : > { %1409 = vmax.xlane.f32.xlu0 %v1408_v15  ;;  %v2198_v15 = vld [vmem:[%s3659_s12 + $0x28] sm:$0xff] }
 0x23e   : > { %v2805_v17 = vpop.f32.mrf.mxu0 }
 0x23f   : > { %v1405_v18 = vsel %vm1389_vm2, %v2805_v17, -inf }
 0x240   : > { %1406 = vmax.xlane.f32.xlu1 %v1405_v18  ;;  %v1267_v19 = vpop.f32.mrf.mxu0  ;;  %v2196_v18 = vld [vmem:[%s3659_s12 + $0x18] sm:$0xff] }
 0x241   : > { %v1402_v20 = vsel %vm1389_vm2, %v1267_v19, -inf }
 0x244   : > { %1403 = vmax.xlane.f32.xlu1 %v1402_v20  ;;  %v2194_v20 = vld [vmem:[%s3659_s12 + $0x8] sm:$0xff] }
 0x252   : > { %826 = vperm.xlu0 %2957, %v816_v21   ;;  %v2193_v21 = vld [vmem:[%s3659_s12] sm:$0xff] }
 0x255   : > { %821 = vperm.xlu1 %2958, %v815_v22   ;;  %v2261_v22 = vld [vmem:[%s3661_s14] sm:$0xff] }
 0x2b9   : > { %v1395_v23 = vpop.xlane.xlu1 %1394 }
 0x2ba   : > { %v1415_v24 = vsub.f32 %v2795_v61, %v1395_v23  ;;  %v2262_v23 = vld [vmem:[%s3661_s14 + $0x8] sm:$0xff] }
 0x2bc   : > { %v1424_v25 = vmul.f32 1.442695, %v1415_v24  ;;  %v2263_v24 = vld [vmem:[%s3661_s14 + $0x10] sm:$0xff] }
 0x2bd   : > { %v1401_v26 = vpop.xlane.xlu0 %1400 }
 0x2be   : > { %2959 = vpow2.f32 %v1424_v25  ;;  %v1417_v27 = vsub.f32 %v2800_v1, %v1401_v26  ;;  %v818_v1 = vld [vmem:[%s3654_s7 + $0x18] sm:$0xff] }
 0x2bf   : > { %v1398_v28 = vpop.xlane.xlu1 %1397  ;;  %v2264_v25 = vld [vmem:[%s3661_s14 + $0x18] sm:$0xff] }
 0x2c0   : > { %v1428_v29 = vmul.f32 1.442695, %v1417_v27  ;;  %v1416_v30 = vsub.f32 %v1154_v3, %v1398_v28  ;;  %v1801_v3 = vld [vmem:[%s3656_s9 + $0x18] sm:$0xff] }
 0x2c1   : > { %v1413_v31 = vpop.xlane.xlu0 %1412 }
 0x2c2   : > { %2961 = vpow2.f32 %v1428_v29  ;;  %v1426_v32 = vmul.f32 1.442695, %v1416_v30  ;;  %v1421_v33 = vsub.f32 %v2810_v8, %v1413_v31  ;;  %v1799_v8 = vld [vmem:[%s3656_s9 + $0x8] sm:$0xff] }
 0x2c3   : > { %v1392_v34 = vpop.xlane.xlu1 %1391 }
 0x2c4   : > { %2963 = vpow2.f32 %v1426_v32  ;;  %v1436_v35 = vmul.f32 1.442695, %v1421_v33  ;;  %v1414_v36 = vsub.f32 %v1041_v63, %v1392_v34  ;;  %v3068_v63 = vmov 0.0  }
 0x2c5   : > { %v1410_v37 = vpop.xlane.xlu0 %1409  ;;  %2811 = vmatprep.subr.mxu0 %v3068_v63  ;;  %2818 = vmatprep.subr.mxu1 %v3068_v63 }
 0x2c6   : > { %v1422_v38 = vmul.f32 1.442695, %v1414_v36  ;;  %v1420_v39 = vsub.f32 %v1380_v13, %v1410_v37  ;;  %2965 = vpow2.f32 %v1436_v35  ;;  %2822 = vmatprep.mubr.msk.f32.mxu1 %vm3069_vm3, %v3068_v63  ;;  %2815 = vmatprep.mubr.msk.f32.mxu0 %vm3069_vm3, %v3068_v63  ;;  %v2200_v13 = vld [vmem:[%s3659_s12 + $0x38] sm:$0xff] }
 0x2c8   : > { %2967 = vpow2.f32 %v1422_v38  ;;  %v1434_v40 = vmul.f32 1.442695, %v1420_v39 }
 0x2c9   : > { %v1407_v41 = vpop.xlane.xlu1 %1406 }
 0x2ca   : > { %v1419_v42 = vsub.f32 %v2805_v17, %v1407_v41  ;;  %2969 = vpow2.f32 %v1434_v40  ;;  %v2197_v17 = vld [vmem:[%s3659_s12 + $0x20] sm:$0xff] }
 0x2cb   : > { %v3340_v43 = vpop.eup %2959 }
 0x2cc   : > { %v1432_v44 = vmul.f32 1.442695, %v1419_v42  ;;  %v1441_v45 = vsel %vm1389_vm2, %v3340_v43, 0.0 }
 0x2cd   : > { %1442 = vadd.xlane.f32.xlu1 %v1441_v45  ;;  %v1404_v46 = vpop.xlane.xlu1 %1403  ;;  %v827_v27 = vpop.permute.xlu0 %826 }
 0x2ce   : > { %2971 = vpow2.f32 %v1432_v44  ;;  %v1418_v47 = vsub.f32 %v1267_v19, %v1404_v46  ;;  %v2195_v19 = vld [vmem:[%s3659_s12 + $0x10] sm:$0xff]  ;;  %v923_v45 = vadd.f32 %v3319_v0, %v827_v27 }
 0x2cf   : > { %v3344_v48 = vpop.eup %2961 }
 0x2d0   : > { %v1430_v49 = vmul.f32 1.442695, %v1418_v47  ;;  %v1447_v50 = vsel %vm1389_vm2, %v3344_v48, 0.0 }
 0x2d1   : > { %v3348_v51 = vpop.eup %2963  ;;  %1448 = vadd.xlane.f32.xlu0 %v1447_v50  ;;  %v822_v26 = vpop.permute.xlu1 %821 }
 0x2d2   : > { %2973 = vpow2.f32 %v1430_v49  ;;  %v1444_v53 = vsel %vm1389_vm2, %v3348_v51, 0.0  ;;  %v918_v47 = vadd.f32 %v3322_v4, %v822_v26 }
 0x2d3   : > { %v3350_v52 = vpop.eup %2965 }
 0x2d4   : > { %v1459_v56 = vsel %vm1389_vm2, %v3350_v52, 0.0 }
 0x2d5   : > { %v3354_v54 = vpop.eup %2967  ;;  %1445 = vadd.xlane.f32.xlu0 %v1444_v53 }
 0x2d6   : > { %v1438_v55 = vsel %vm1389_vm2, %v3354_v54, 0.0 }
 0x2d7   : > { %1439 = vadd.xlane.f32.xlu1 %v1438_v55  ;;  %v3360_v57 = vpop.eup %2969 }
 0x2d8   : > { %v1456_v60 = vsel %vm1389_vm2, %v3360_v57, 0.0 }
 0x2d9   : > { %1460 = vadd.xlane.f32.xlu0 %v1459_v56  ;;  %v1794_v56 = vld [vmem:[%s3655_s8] sm:$0xff] }
 0x2db   : > { %v3362_v58 = vpop.eup %2971 }
 0x2dc   : > { %v1453_v59 = vsel %vm1389_vm2, %v3362_v58, 0.0 }
 0x2dd   : > { %1454 = vadd.xlane.f32.xlu1 %v1453_v59  ;;  %1457 = vadd.xlane.f32.xlu0 %v1456_v60 }
 0x2df   : > { %v3368_v61 = vpop.eup %2973 }
 0x2e0   : > { %v1450_v62 = vsel %vm1389_vm2, %v3368_v61, 0.0 }
 0x2e1   : > { %1451 = vadd.xlane.f32.xlu1 %v1450_v62 }
 0x2f2   : > { %836 = vperm.xlu1 %2958, %v818_v1   ;;  %v1796_v1 = vld [vmem:[%s3655_s8 + $0x10] sm:$0xff] }
 0x2f3   : > { %831 = vperm.xlu0 %2957, %v817_v2   ;;  %v1797_v2 = vld [vmem:[%s3655_s8 + $0x18] sm:$0xff] }
 0x2f6   : > { %1819 = vperm.xlu1 %2958, %v1801_v3   ;;  %v1919_v3 = vld [vmem:[%s3657_s10] sm:$0xff] }
 0x2f7   : > { %1814 = vperm.xlu0 %2957, %v1800_v5   ;;  %v1920_v5 = vld [vmem:[%s3657_s10 + $0x8] sm:$0xff] }
 0x2fa   : > { %1809 = vperm.xlu1 %2958, %v1799_v8   ;;  %v1927_v8 = vld [vmem:[%s3658_s11] sm:$0xff] }
 0x2fb   : > { %1804 = vperm.xlu0 %2957, %v1798_v9   ;;  %v1921_v9 = vld [vmem:[%s3657_s10 + $0x10] sm:$0xff] }
 0x2fe   : > { %2238 = vperm.xlu1 %2958, %v2200_v13   ;;  %v1922_v13 = vld [vmem:[%s3657_s10 + $0x18] sm:$0xff] }
 0x2ff   : > { %2233 = vperm.xlu0 %2957, %v2199_v14   ;;  %v1923_v14 = vld [vmem:[%s3657_s10 + $0x20] sm:$0xff] }
 0x302   : > { %2228 = vperm.xlu1 %2958, %v2198_v15   ;;  %v1924_v15 = vld [vmem:[%s3657_s10 + $0x28] sm:$0xff] }
 0x303   : > { %2223 = vperm.xlu0 %2957, %v2197_v17   ;;  %v1925_v17 = vld [vmem:[%s3657_s10 + $0x30] sm:$0xff] }
 0x306   : > { %2218 = vperm.xlu1 %2958, %v2196_v18   ;;  %v1926_v18 = vld [vmem:[%s3657_s10 + $0x38] sm:$0xff] }
 0x307   : > { %2213 = vperm.xlu0 %2957, %v2195_v19  }
 0x30a   : > { %2208 = vperm.xlu1 %2958, %v2194_v20  }
 0x30b   : > { %2203 = vperm.xlu0 %2957, %v2193_v21  }
 0x30e   : > { %2267 = vperm.xlu1 %2958, %v2261_v22  }
 0x30f   : > { %2272 = vperm.xlu0 %2957, %v2262_v23  }
 0x312   : > { %2277 = vperm.xlu1 %2958, %v2263_v24  }
 0x313   : > { %2282 = vperm.xlu0 %2957, %v2264_v25  }
 0x356   : > { %v1443_v28 = vpop.xlane.xlu1 %1442 }
 0x357   : > { %2975 = vrcp.f32 %v1443_v28 }
 0x35a   : > { %v1449_v29 = vpop.xlane.xlu0 %1448 }
 0x35b   : > { %2977 = vrcp.f32 %v1449_v29 }
 0x35e   : > { %v1446_v30 = vpop.xlane.xlu0 %1445 }
 0x35f   : > { %2979 = vrcp.f32 %v1446_v30 }
 0x360   : > { %v1440_v31 = vpop.xlane.xlu1 %1439 }
 0x361   : > { %2981 = vrcp.f32 %v1440_v31  ;;  %v1928_v31 = vld [vmem:[%s3658_s11 + $0x8] sm:$0xff] }
 0x362   : > { %v1461_v32 = vpop.xlane.xlu0 %1460 }
 0x363   : > { %2983 = vrcp.f32 %v1461_v32  ;;  %v1929_v32 = vld [vmem:[%s3658_s11 + $0x10] sm:$0xff] }
 0x364   : > { %v2976_v33 = vpop.eup %2975 }
 0x365   : > { %v1465_v34 = vmul.f32 %v2976_v33, %v3340_v43  ;;  %v1930_v33 = vld [vmem:[%s3658_s11 + $0x18] sm:$0xff] }
 0x366   : > { %v1455_v35 = vpop.xlane.xlu1 %1454  ;;  %v1458_v36 = vpop.xlane.xlu0 %1457 }
 0x367   : > { %2985 = vrcp.f32 %v1455_v35  ;;  %2812 = vmatpush3.xpose.msk.msra.mxu0 %vm1389_vm2, %v1465_v34  ;;  %v1931_v34 = vld [vmem:[%s3658_s11 + $0x20] sm:$0xff]  ;;  %v1932_v35 = vld [vmem:[%s3658_s11 + $0x28] sm:$0xff] }
 0x368   : > { %v2978_v37 = vpop.eup %2977  ;;  %2987 = vrcp.f32 %v1458_v36  ;;  %2813 = vmatprep.subr.mxu0 %v3068_v63  ;;  %v1933_v36 = vld [vmem:[%s3658_s11 + $0x30] sm:$0xff] }
 0x369   : > { %v1469_v38 = vmul.f32 %v2978_v37, %v3344_v48  ;;  %v1934_v37 = vld [vmem:[%s3658_s11 + $0x38] sm:$0xff] }
 0x36a   : > { %v1452_v39 = vpop.xlane.xlu1 %1451 }
 0x36b   : > { %2989 = vrcp.f32 %v1452_v39  ;;  %2819 = vmatpush3.xpose.msk.msra.mxu1 %vm1389_vm2, %v1469_v38  ;;  %v2257_v38 = vld [vmem:[%s3660_s13] sm:$0xff] }
 0x36c   : > { %v2980_v40 = vpop.eup %2979  ;;  %2820 = vmatprep.subr.mxu1 %v3068_v63 }
 0x36d   : > { %v1467_v41 = vmul.f32 %v2980_v40, %v3348_v51 }
 0x36e   : > { %v2982_v42 = vpop.eup %2981  ;;  %v837_v4 = vpop.permute.xlu1 %836 }
 0x36f   : > { %2821 = vmatpush3.xpose.msk.msra.mxu1 %vm1389_vm2, %v1467_v41  ;;  %v1463_v43 = vmul.f32 %v2982_v42, %v3354_v54  ;;  %v832_v53 = vpop.permute.xlu0 %831 }
 0x370   : > { %v2984_v44 = vpop.eup %2983  ;;  %2832 = vmatprep.subr.mxu1 %v3068_v63  ;;  %v928_v55 = vadd.f32 %v3330_v16, %v832_v53  ;;  %v1795_v16 = vld [vmem:[%s3655_s8 + $0x8] sm:$0xff] }
 0x371   : > { %2814 = vmatpush3.xpose.msk.msra.mxu0 %vm1389_vm2, %v1463_v43  ;;  %v1477_v46 = vmul.f32 %v2984_v44, %v3350_v52  ;;  %v933_v52 = vadd.f32 %v3326_v11, %v837_v4 }
 0x372   : > { %2823 = vmatmul.mubr.msk.f32.vlgmr.msra.gmra.mxu1 %vm1389_vm2, %v923_v45  ;;  %2825 = vmatprep.subr.mxu0 %v3068_v63  ;;  %v1820_v20 = vpop.permute.xlu1 %1819 }
 0x373   : > { %2833 = vmatpush3.xpose.msk.msra.mxu1 %vm1389_vm2, %v1477_v46  ;;  %2836 = vmatprep.mubr.msk.f32.mxu1 %vm3069_vm3, %v3068_v63  ;;  %v1815_v22 = vpop.permute.xlu0 %1814 }
 0x374   : > { %v2986_v48 = vpop.eup %2985  ;;  %2816 = vmatmul.mubr.msk.f32.vlgmr.msra.gmra.mxu0 %vm1389_vm2, %v918_v47  ;;  %2834 = vmatprep.subr.mxu1 %v3068_v63 }
 0x375   : > { %v2988_v0 = vpop.eup %2987  ;;  %v1473_v49 = vmul.f32 %v2986_v48, %v3362_v58  ;;  %2829 = vmatprep.mubr.msk.f32.mxu0 %vm3069_vm3, %v3068_v63 }
 0x376   : > { %v1475_v50 = vmul.f32 %v2988_v0, %v3360_v57  ;;  %v1810_v27 = vpop.permute.xlu1 %1809 }
 0x377   : > { %2826 = vmatpush3.xpose.msk.msra.mxu0 %vm1389_vm2, %v1473_v49  ;;  %v1805_v29 = vpop.permute.xlu0 %1804 }
 0x378   : > { %v2990_v51 = vpop.eup %2989  ;;  %2835 = vmatpush3.xpose.msk.msra.mxu1 %vm1389_vm2, %v1475_v50  ;;  %2827 = vmatprep.subr.mxu0 %v3068_v63 }
 0x379   : > { %v1471_v54 = vmul.f32 %v2990_v51, %v3368_v61 }
 0x37a   : > { %v2239_v47 = vpop.permute.xlu1 %2238 }
 0x37b   : > { %2837 = vmatmul.mubr.msk.f32.vlgmr.msra.gmra.mxu1 %vm1389_vm2, %v933_v52  ;;  %2828 = vmatpush3.xpose.msk.msra.mxu0 %vm1389_vm2, %v1471_v54  ;;  %v2234_v49 = vpop.permute.xlu0 %2233 }
 0x37c   : > { %2861 = vmatprep.mubr.msk.f32.mxu1 %vm588_vm0, %v1927_v8 }
 0x37e   : > { %2830 = vmatmul.mubr.msk.f32.vlgmr.msra.gmra.mxu0 %vm1389_vm2, %v928_v55  ;;  %v2229_v52 = vpop.permute.xlu1 %2228 }
 0x37f   : > { %2847 = vmatprep.mubr.msk.f32.mxu0 %vm588_vm0, %v1794_v56  ;;  %v2224_v54 = vpop.permute.xlu0 %2223 }
 0x383   : > { %v2214_v8 = vpop.permute.xlu0 %2213 }
 0x432   : > { %v1632_v57 = vpop.f32.mrf.mxu1 }
 0x434   : > { %v1553_v58 = vpop.f32.mrf.mxu0  ;;  %v2824_v11 = vpop.f32.mrf.mxu1 }
 0x436   : > { %v2817_v59 = vpop.f32.mrf.mxu0 }
 0x43b   : > { %v1790_v60 = vpop.f32.mrf.mxu1 }
 0x43c   : > { %2839 = vmatprep.subr.mxu0 %v1790_v60 }
 0x43d   : > { %v2838_v61 = vpop.f32.mrf.mxu1  ;;  %2840 = vmatpush3.msra.mxu0 %v1790_v60 }
 0x43e   : > { %v1711_v62 = vpop.f32.mrf.mxu0 }
 0x43f   : > { %2841 = vmatprep.subr.mxu0 %v1711_v62 }
 0x440   : > { %v2831_v63 = vpop.f32.mrf.mxu0  ;;  %2842 = vmatpush3.msra.mxu0 %v1711_v62 }
 0x441   : > { %2843 = vmatprep.subr.mxu0 %v1632_v57 }
 0x442   : > { %2844 = vmatpush3.msra.mxu0 %v1632_v57 }
 0x443   : > { %2845 = vmatprep.subr.mxu0 %v1553_v58 }
 0x444   : > { %2846 = vmatpush3.msra.mxu0 %v1553_v58 }
 0x445   : > { %2848 = vmatmul.mubr.msk.f32.vlgmr.msra.gmra.mxu0 %vm588_vm0, %v1795_v16  ;;  %2873 = vmatprep.subr.mxu0 %v3232_v6 }
 0x446   : > { %2850 = vmatprep.mubr.msk.f32.mxu0 %vm588_vm0, %v1796_v1  ;;  %2874 = vmatpush3.msra.mxu0 %v3232_v6  ;;  %v2219_v1 = vpop.permute.xlu1 %2218 }
 0x447   : > { %2875 = vmatprep.subr.mxu0 %v3239_v7 }
 0x448   : > { %2876 = vmatpush3.msra.mxu0 %v3239_v7 }
 0x449   : > { %2851 = vmatmul.mubr.msk.f32.gmra.mxu0 %vm588_vm0, %v1797_v2  ;;  %2877 = vmatprep.subr.mxu0 %v3244_v10 }
 0x44a   : > { %2878 = vmatpush3.msra.mxu0 %v3244_v10  ;;  %2881 = vmatprep.mubr.msk.f32.mxu0 %vm588_vm0, %v1919_v3 }
 0x44b   : > { %2879 = vmatprep.subr.mxu0 %v3249_v12 }
 0x44c   : > { %2880 = vmatpush3.msra.mxu0 %v3249_v12 }
 0x44d   : > { %2882 = vmatmul.mubr.msk.f32.vlgmr.msra.gmra.mxu0 %vm588_vm0, %v1920_v5 }
 0x44e   : > { %2884 = vmatprep.mubr.msk.f32.mxu0 %vm588_vm0, %v1921_v9 }
 0x451   : > { %2885 = vmatmul.mubr.msk.f32.gmra.mxu0 %vm588_vm0, %v1922_v13 }
 0x452   : > { %2887 = vmatprep.mubr.msk.f32.mxu0 %vm588_vm0, %v1923_v14 }
 0x455   : > { %2888 = vmatmul.mubr.msk.f32.gmra.mxu0 %vm588_vm0, %v1924_v15 }
 0x456   : > { %2890 = vmatprep.mubr.msk.f32.mxu0 %vm588_vm0, %v1925_v17 }
 0x459   : > { %2891 = vmatmul.mubr.msk.f32.gmra.mxu0 %vm588_vm0, %v1926_v18 }
 0x505   : > { %v2849_v19 = vpop.f32.mrf.mxu0 }
 0x506   : > { %v1906_v28 = vadd.f32 %v2849_v19, %v1810_v27  ;;  %v2209_v19 = vpop.permute.xlu1 %2208  ;;  %v2258_v27 = vld [vmem:[%s3660_s13 + $0x8] sm:$0xff] }
 0x507   : > { %v1900_v21 = vpop.f32.mrf.mxu0 }
 0x508   : > { %v1901_v30 = vadd.f32 %v1900_v21, %v1805_v29  ;;  %v2260_v29 = vld [vmem:[%s3660_s13 + $0x18] sm:$0xff] }
 0x509   : > { %v2852_v23 = vpop.f32.mrf.mxu0 }
 0x50a   : > { %v1916_v24 = vadd.f32 %v2852_v23, %v1820_v20 }
 0x50b   : > { %v1910_v25 = vpop.f32.mrf.mxu0 }
 0x50c   : > { %v1911_v26 = vadd.f32 %v1910_v25, %v1815_v22  ;;  %2853 = vmatprep.subr.mxu1 %v1916_v24  ;;  %v2204_v22 = vpop.permute.xlu0 %2203 }
 0x50d   : > { %2854 = vmatpush3.msra.mxu1 %v1916_v24  ;;  %v2883_v39 = vpop.f32.mrf.mxu0 }
 0x50e   : > { %2855 = vmatprep.subr.mxu1 %v1911_v26 }
 0x50f   : > { %2856 = vmatpush3.msra.mxu1 %v1911_v26  ;;  %v2154_v40 = vpop.f32.mrf.mxu0 }
 0x510   : > { %2857 = vmatprep.subr.mxu1 %v1906_v28 }
 0x511   : > { %2858 = vmatpush3.msra.mxu1 %v1906_v28  ;;  %v2886_v41 = vpop.f32.mrf.mxu0  ;;  %v2259_v28 = vld [vmem:[%s3660_s13 + $0x10] sm:$0xff] }
 0x512   : > { %2859 = vmatprep.subr.mxu1 %v1901_v30 }
 0x513   : > { %2860 = vmatpush3.msra.mxu1 %v1901_v30  ;;  %v2164_v42 = vpop.f32.mrf.mxu0  ;;  %v2401_v30 = vmul.f32 %v3244_v10, %v3244_v10 }
 0x514   : > { %2862 = vmatmul.mubr.msk.f32.vlgmr.msra.gmra.mxu1 %vm588_vm0, %v1928_v31  ;;  %v2400_v31 = vmul.f32 %v3249_v12, %v3249_v12 }
 0x515   : > { %2864 = vmatprep.mubr.msk.f32.mxu1 %vm588_vm0, %v1929_v32  ;;  %v2889_v45 = vpop.f32.mrf.mxu0  ;;  %v2402_v32 = vmul.f32 %v3239_v7, %v3239_v7 }
 0x517   : > { %v2174_v0 = vpop.f32.mrf.mxu0 }
 0x518   : > { %2865 = vmatmul.mubr.msk.f32.gmra.mxu1 %vm588_vm0, %v1930_v33  ;;  %v2405_v33 = vsel %vm1389_vm2, %v2401_v30, 0.0 }
 0x519   : > { %2867 = vmatprep.mubr.msk.f32.mxu1 %vm588_vm0, %v1931_v34  ;;  %v2892_v51 = vpop.f32.mrf.mxu0  ;;  %v2404_v34 = vsel %vm1389_vm2, %v2400_v31, 0.0 }
 0x51b   : > { %v2184_v57 = vpop.f32.mrf.mxu0 }
 0x51c   : > { %2868 = vmatmul.mubr.msk.f32.gmra.mxu1 %vm588_vm0, %v1932_v35  ;;  %v2406_v35 = vadd.f32 %v2405_v33, %v2404_v34 }
 0x51d   : > { %2870 = vmatprep.mubr.msk.f32.mxu1 %vm588_vm0, %v1933_v36  ;;  %v2403_v36 = vmul.f32 %v3232_v6, %v3232_v6 }
 0x520   : > { %2871 = vmatmul.mubr.msk.f32.gmra.mxu1 %vm588_vm0, %v1934_v37  ;;  %v2407_v37 = vsel %vm1389_vm2, %v2402_v32, 0.0 }
 0x521   : > { %2909 = vmatprep.mubr.msk.f32.mxu1 %vm2285_vm4, %v2257_v38  ;;  %v2408_v38 = vadd.f32 %v2407_v37, %v2406_v35 }
 0x5d4   : > { %v2863_v43 = vpop.f32.mrf.mxu1 }
 0x5d5   : > { %v2160_v9 = vadd.f32 %v2883_v39, %v2863_v43  ;;  %v2409_v39 = vsel %vm1389_vm2, %v2403_v36, 0.0  ;;  %v2273_v43 = vpop.permute.xlu0 %2272 }
 0x5d6   : > { %v2025_v44 = vpop.f32.mrf.mxu1 }
 0x5d7   : > { %v2155_v15 = vadd.f32 %v2154_v40, %v2025_v44  ;;  %v2242_v20 = vadd.f32 %v2209_v19, %v2160_v9  ;;  %v2410_v40 = vadd.f32 %v2409_v39, %v2408_v38  ;;  %v2268_v44 = vpop.permute.xlu1 %2267 }
 0x5d8   : > { %v2866_v46 = vpop.f32.mrf.mxu1 }
 0x5d9   : > { %v2170_v61 = vadd.f32 %v2886_v41, %v2866_v46  ;;  %v2241_v23 = vadd.f32 %v2204_v22, %v2155_v15  ;;  %v2250_v25 = vmax.f32 %v2242_v20, 0.0  ;;  %v2411_v41 = vrot.slane %v2410_v40, 4  ;;  %v3589_v15 = vld [vmem:[%s3229_s30 + $0x10] sm:$0xff] }
 0x5da   : > { %v2035_v48 = vpop.f32.mrf.mxu1 }
 0x5db   : > { %v2165_v2 = vadd.f32 %v2164_v42, %v2035_v48  ;;  %v2244_v13 = vadd.f32 %v2219_v1, %v2170_v61  ;;  %v2249_v26 = vmax.f32 %v2241_v23, 0.0  ;;  %v2412_v42 = vadd.f32 %v2411_v41, %v2410_v40  ;;  %v3596_v23 = vld [vmem:[%s3229_s30 + $0x18] sm:$0xff] }
 0x5dc   : > { %v2869_v4 = vpop.f32.mrf.mxu1 }
 0x5dd   : > { %v2180_v55 = vadd.f32 %v2889_v45, %v2869_v4  ;;  %v2243_v17 = vadd.f32 %v2214_v8, %v2165_v2  ;;  %v2252_v21 = vmax.f32 %v2244_v13, 0.0  ;;  %v2413_v46 = vrot.slane %v2412_v42, 2 }
 0x5de   : > { %v2045_v50 = vpop.f32.mrf.mxu1 }
 0x5df   : > { %v2175_v11 = vadd.f32 %v2174_v0, %v2045_v50  ;;  %v2246_v62 = vadd.f32 %v2229_v52, %v2180_v55  ;;  %v2251_v24 = vmax.f32 %v2243_v17, 0.0  ;;  %v2414_v6 = vadd.f32 %v2413_v46, %v2412_v42 }
 0x5e0   : > { %v2872_v53 = vpop.f32.mrf.mxu1 }
 0x5e1   : > { %v2190_v56 = vadd.f32 %v2892_v51, %v2872_v53  ;;  %v2245_v3 = vadd.f32 %v2224_v54, %v2175_v11  ;;  %v2254_v14 = vmax.f32 %v2246_v62, 0.0  ;;  %v2278_v51 = vpop.permute.xlu1 %2277  ;;  %v2415_v11 = vrot.slane %v2414_v6, 1 }
 0x5e2   : > { %v2055_v58 = vpop.f32.mrf.mxu1 }
 0x5e3   : > { %v2248_v59 = vadd.f32 %v2239_v47, %v2190_v56  ;;  %v2185_v60 = vadd.f32 %v2184_v57, %v2055_v58  ;;  %v2253_v18 = vmax.f32 %v2245_v3, 0.0 }
 0x5e5   : > { %v2256_v63 = vmax.f32 %v2248_v59, 0.0  ;;  %v2247_v16 = vadd.f32 %v2234_v49, %v2185_v60  ;;  %v2283_v49 = vpop.permute.xlu0 %2282 }
 0x5e7   : > { %v2255_v5 = vmax.f32 %v2247_v16, 0.0  ;;  %2893 = vmatprep.subr.mxu1 %v2256_v63 }
 0x5e8   : > { %2894 = vmatpush3.msra.mxu1 %v2256_v63  ;;  %v2416_v63 = vadd.f32 %v2415_v11, %v2414_v6 }
 0x5e9   : > { %2895 = vmatprep.subr.mxu1 %v2255_v5 }
 0x5ea   : > { %2896 = vmatpush3.msra.mxu1 %v2255_v5  ;;  %2991 = vrsqrt.f32 %v2416_v63  ;;  %vm2419_vm5 = vcmp.eq.f32.partialorder %v2416_v63, inf  ;;  %vm2421_vm6 = vcmp.eq.f32.partialorder %v2416_v63, 0.0 }
 0x5eb   : > { %2897 = vmatprep.subr.mxu1 %v2254_v14 }
 0x5ec   : > { %2898 = vmatpush3.msra.mxu1 %v2254_v14 }
 0x5ed   : > { %2899 = vmatprep.subr.mxu1 %v2253_v18 }
 0x5ee   : > { %2900 = vmatpush3.msra.mxu1 %v2253_v18 }
 0x5ef   : > { %2901 = vmatprep.subr.mxu1 %v2252_v21 }
 0x5f0   : > { %2902 = vmatpush3.msra.mxu1 %v2252_v21 }
 0x5f1   : > { %2903 = vmatprep.subr.mxu1 %v2251_v24 }
 0x5f2   : > { %2904 = vmatpush3.msra.mxu1 %v2251_v24 }
 0x5f3   : > { %2905 = vmatprep.subr.mxu1 %v2250_v25 }
 0x5f4   : > { %2906 = vmatpush3.msra.mxu1 %v2250_v25 }
 0x5f5   : > { %2907 = vmatprep.subr.mxu1 %v2249_v26 }
 0x5f6   : > { %2908 = vmatpush3.msra.mxu1 %v2249_v26  ;;  %v2422_v26 = vand.u32 2147483648, %v2416_v63 }
 0x5f7   : > { %2910 = vmatmul.mubr.msk.f32.vlgmr.msra.gmra.mxu1 %vm2285_vm4, %v2258_v27  ;;  %v2992_v19 = vpop.eup %2991 }
 0x5f8   : > { %2912 = vmatprep.mubr.msk.f32.mxu1 %vm2285_vm4, %v2259_v28  ;;  %v2418_v25 = vmul.f32 %v2992_v19, %v2416_v63 }
 0x5fa   : > { %v2420_v28 = vsel %vm2419_vm5, %v2416_v63, %v2418_v25 }
 0x5fb   : > { %2913 = vmatmul.mubr.msk.f32.gmra.mxu1 %vm2285_vm4, %v2260_v29  ;;  %v2423_v30 = vsel %vm2421_vm6, %v2422_v26, %v2420_v28 }
 0x5fc   : > { %v2424_v34 = vadd.f32 1e-05, %v2423_v30 }
 0x6b7   : > { %v2911_v45 = vpop.f32.mrf.mxu1 }
 0x6b8   : > { %v2370_v7 = vadd.f32 %v2911_v45, %v2273_v43 }
 0x6b9   : > { %v2364_v47 = vpop.f32.mrf.mxu1 }
 0x6ba   : > { %v2365_v48 = vadd.f32 %v2364_v47, %v2268_v44  ;;  %v2426_v4 = vmul.f32 %v2370_v7, %v2370_v7  ;;  %v2384_v14 = vmul.f32 %v2370_v7, %v3244_v10 }
 0x6bb   : > { %v2914_v0 = vpop.f32.mrf.mxu1 }
 0x6bc   : > { %v2425_v50 = vmul.f32 %v2365_v48, %v2365_v48  ;;  %v2380_v52 = vadd.f32 %v2914_v0, %v2283_v49  ;;  %v2430_v56 = vsel %vm1389_vm2, %v2426_v4, 0.0  ;;  %v2383_v9 = vmul.f32 %v2365_v48, %v3249_v12 }
 0x6bd   : > { %v2374_v53 = vpop.f32.mrf.mxu1  ;;  %v2388_v20 = vsel %vm1389_vm2, %v2384_v14, 0.0 }
 0x6be   : > { %v2429_v54 = vsel %vm1389_vm2, %v2425_v50, 0.0  ;;  %v2375_v55 = vadd.f32 %v2374_v53, %v2278_v51  ;;  %v2428_v57 = vmul.f32 %v2380_v52, %v2380_v52  ;;  %v2387_v18 = vsel %vm1389_vm2, %v2383_v9, 0.0 }
 0x6bf   : > { %v2431_v59 = vadd.f32 %v2430_v56, %v2429_v54  ;;  %v2389_v22 = vadd.f32 %v2388_v20, %v2387_v18  ;;  %v2386_v12 = vmul.f32 %v3596_v23, %v2380_v52 }
 0x6c0   : > { %v2427_v58 = vmul.f32 %v2375_v55, %v2375_v55  ;;  %v2434_v62 = vsel %vm1389_vm2, %v2428_v57, 0.0  ;;  %v2385_v17 = vmul.f32 %v3589_v15, %v2375_v55 }
 0x6c1   : > { %v2392_v10 = vsel %vm1389_vm2, %v2386_v12, 0.0 }
 0x6c2   : > { %v2432_v60 = vsel %vm1389_vm2, %v2427_v58, 0.0  ;;  %v2390_v21 = vsel %vm1389_vm2, %v2385_v17, 0.0 }
 0x6c3   : > { %v2433_v61 = vadd.f32 %v2432_v60, %v2431_v59  ;;  %v2391_v24 = vadd.f32 %v2390_v21, %v2389_v22 }
 0x6c5   : > { %v2435_v16 = vadd.f32 %v2434_v62, %v2433_v61  ;;  %v2393_v27 = vadd.f32 %v2392_v10, %v2391_v24 }
 0x6c7   : > { %v2436_v1 = vrot.slane %v2435_v16, 4  ;;  %v2394_v31 = vrot.slane %v2393_v27, 4 }
 0x6c9   : > { %v2437_v2 = vadd.f32 %v2436_v1, %v2435_v16  ;;  %v2395_v37 = vadd.f32 %v2394_v31, %v2393_v27 }
 0x6cb   : > { %v2438_v3 = vrot.slane %v2437_v2, 2  ;;  %v2396_v40 = vrot.slane %v2395_v37, 2 }
 0x6cd   : > { %v2439_v5 = vadd.f32 %v2438_v3, %v2437_v2  ;;  %v2397_v41 = vadd.f32 %v2396_v40, %v2395_v37 }
 0x6cf   : > { %v2440_v8 = vrot.slane %v2439_v5, 1  ;;  %v2398_v42 = vrot.slane %v2397_v41, 1 }
 0x6d1   : > { %v2441_v13 = vadd.f32 %v2440_v8, %v2439_v5  ;;  %v2399_v43 = vadd.f32 %v2398_v42, %v2397_v41 }
 0x6d3   : > { %2993 = vrsqrt.f32 %v2441_v13  ;;  %vm2444_vm7 = vcmp.eq.f32.partialorder %v2441_v13, inf  ;;  %v2447_v33 = vand.u32 2147483648, %v2441_v13  ;;  %vm2446_vm8 = vcmp.eq.f32.partialorder %v2441_v13, 0.0 }
 0x6e0   : > { %v2994_v29 = vpop.eup %2993 }
 0x6e1   : > { %v2443_v32 = vmul.f32 %v2994_v29, %v2441_v13 }
 0x6e3   : > { %v2445_v35 = vsel %vm2444_vm7, %v2441_v13, %v2443_v32 }
 0x6e4   : > { %v2448_v36 = vsel %vm2446_vm8, %v2447_v33, %v2445_v35 }
 0x6e5   : > { %v2449_v38 = vadd.f32 1e-05, %v2448_v36 }
 0x6e7   : > { %v2450_v39 = vmul.f32 %v2449_v38, %v2424_v34 }
 0x6e9   : > { %2995 = vrcp.f32 %v2450_v39 }
 0x6f6   : > { %v2996_v44 = vpop.eup %2995 }
 0x6f7   : > { %v2452_v45 = vmul.f32 %v2996_v44, %v2399_v43 }
 0x6f9   : > { %v2455_v7 = vmul.f32 40.0, %v2452_v45  ;;  %2454 = vst.msk [vmem:[%s536_s19] sm:$0x1] %vm2453_vm9, %v2452_v45 }
 0x6fb   : > { %v2456_v46 = vmul.f32 1.442695, %v2455_v7 }
 0x6fd   : > { %2997 = vpow2.f32 %v2456_v46 }
 0x70a   : > { %v2998_v47 = vpop.eup %2997 }
 0x70b   : > { %v2458_v48 = vsel %vm1389_vm2, %v2998_v47, 0.0 }
 0x70c   : > { %2459 = vadd.xlane.f32.xlu1 %v2458_v48 }
 0x70d   : > { %3018 = shalt.err (!%p3015_p3)
}
 0x70e   : > { %s3019_s25 = scalar_lea.hbm %s2491_s18, 16  ;;  %s3023_s20 = scalar_lea.hbm %s3663_s16, 64 }
 0x70f   : > { %p3020_p4 = scmp.ne.s32.totalorder %s2491_s18, %s3019_s25  ;;  %p3024_p9 = scmp.lt.s32.totalorder %s2491_s18, %s3663_s16 }
 0x710   : > { %p3025_p10 = scmp.lt.s32.totalorder %s3023_s20, %s3019_s25 }
 0x711   : > { %p3021_p7 = pnand %p3020_p4, %p3194_p5 }
 0x712   : > { %p3026_p11 = por %p3025_p10, %p3024_p9 }
 0x713   : > { %p3022_p8 = pneg %p3021_p7 }
 0x715   : > { %p3027_p12 = pnand %p3026_p11, %p3022_p8 }
 0x717   : > { %3030 = shalt.err (!%p3027_p12)
}
 0x718   : > { %2915 = dma.vmem_to_hbm [thread:$0]  (%p3194_p5), %s2494_s26, 16, %s2491_s18, %s2478_s21   ;;  %v3003_v6 = vld [vmem:[%s3229_s30] sm:$0xff]  ;;  %v3004_v52 = vld [vmem:[%s3229_s30 + $0x8] sm:$0xff] }
 0x719   : > { %s551_s27 = scalar_lea.vmem %s3662_s15, %s3220_s23 }
 0x795   : > { %v2460_v0 = vpop.xlane.xlu1 %2459 }
 0x796   : > { %2999 = vrcp.f32 %v2460_v0 }
 0x7a3   : > { %v3000_v49 = vpop.eup %2999 }
 0x7a4   : > { %v2462_v4 = vmul.f32 %v3000_v49, %v2998_v47 }
 0x7a6   : > { %v2463_v50 = vadd.f32 1.0, %v2462_v4 }
 0x7a8   : > { %v2464_v51 = vmul.f32 %v3003_v6, %v2463_v50  ;;  %v2465_v53 = vmul.f32 %v3004_v52, %v2463_v50  ;;  %v2466_v54 = vmul.f32 %v3589_v15, %v2463_v50  ;;  %v2467_v55 = vmul.f32 %v3596_v23, %v2463_v50 }
 0x7aa   : > { %2468 = vst.msk [vmem:[%s551_s27] sm:$0xff] %vm1389_vm2, %v2464_v51  ;;  %2469 = vst.msk [vmem:[%s551_s27 + $0x8] sm:$0xff] %vm1389_vm2, %v2465_v53 }
 0x7ab   : > { %2470 = vst.msk [vmem:[%s551_s27 + $0x10] sm:$0xff] %vm1389_vm2, %v2466_v54  ;;  %2471 = vst.msk [vmem:[%s551_s27 + $0x18] sm:$0xff] %vm1389_vm2, %v2467_v55 }
 0x7ac PF: > { %s3684_s0 = sld [smem:[#allocation5_spill]]  ;;  %p2921_p5 = scmp.ge.s32.totalorder %s3065_s24, 2 }
 0x7ae   : > { %p2918_p13 = pnand %p2921_p5, %p3198_p6 }
 0x7b0   : > { %p2919_p0 = pneg %p2918_p13 }
 0x7b2   : > { %s2513_s26 = sand.u32 1, %s3684_s0  }
 0x7b3   : > { %s2514_s30 = scalar_lea.sflag [#allocation3], %s2513_s26 }
 0x7b4   : > { %3048 = dma.done.wait (%p2919_p0), %s2514_s30, 16  }
 0x7b5   : > { %3050 = vsyncadd (%p2919_p0), %s2514_s30, 4294967280  ;;  %s3686_s24 = sld [smem:[#allocation7_spill]]  ;;  %s3689_s21 = smov %s3057_s22 }
 0x7b6   : > { %s3687_s18 = sld [smem:[#allocation6_spill]] }
 0x7b7   : > { %s3688_s23 = sld [smem:[#allocation8_spill]] }
 0x7bb   : > { %p27_p1 = scmp.ge.s32.totalorder %s3686_s24, 6  }
 0x7bc   : > { %s3690_s22 = smov %s3687_s18 }
 0x7bd   :  { %29 = sbr.rel (!%p27_p1) target bundleno = 8 (0x8), region = 130 }
 0x7c2   :  { %2518 = vsyncpa [#allocation3], 1 }
 0x7c3   :  { %2520 = vsyncpa [#allocation3 + $0x1], 1 }

</bundles_post_ra>
